<compile_context>
chip_gen: v7x
topology: tpu7x:2x2x1
jax: 0.10.0
libtpu: 0.0.40
codegen_flags: <defaults>
</compile_context>

<pallas_src>
import jax
import jax.numpy as jnp
from jax.experimental import pallas as pl
from jax.experimental.pallas import tpu as pltpu


def _round_up(n, m):
    return ((n + m - 1) // m) * m


def attention_gate_kernel(x_ref, w1_ref, w2_ref, out_ref):
    """One batch tile: out = x * sigmoid(relu(x @ w1) @ w2)."""
    x = x_ref[...]                                                 # (TB, Cp) f32
    h = jnp.maximum(
        jnp.dot(x, w1_ref[...], preferred_element_type=jnp.float32), 0.0)
    g = jax.nn.sigmoid(
        jnp.dot(h, w2_ref[...], preferred_element_type=jnp.float32))
    out_ref[...] = (x * g).astype(out_ref.dtype)


def attention_block_forward(x, w1, w2, *, block_b=256):
    """x: (B, C) f32; w1: (C, C//16); w2: (C//16, C) (weights pre-transposed)."""
    B, C = x.shape
    H = w1.shape[1]

    # Lane-dense padding + MXU-aligned batch tile.
    Cp = _round_up(C, 128)
    Hp = _round_up(max(H, 1), 128)
    TB = min(block_b, _round_up(B, 8))
    Bp = _round_up(B, TB)

    x_p = jnp.pad(x, ((0, Bp - B), (0, Cp - C)))
    w1_p = jnp.pad(w1, ((0, Cp - C), (0, Hp - H)))
    w2_p = jnp.pad(w2, ((0, Hp - H), (0, Cp - C)))

    grid = (Bp // TB,)
    flops = 4 * Bp * Cp * Hp + 2 * Bp * Cp           # two matmuls + gate multiply
    bytes_accessed = (2 * Bp * Cp + 2 * Cp * Hp) * 4

    out_p = pl.pallas_call(
        attention_gate_kernel,
        out_shape=jax.ShapeDtypeStruct((Bp, Cp), x.dtype),
        grid=grid,
        in_specs=[
            pl.BlockSpec((TB, Cp), lambda i: (i, 0)),   # x tile (pipelined)
            pl.BlockSpec((Cp, Hp), lambda i: (0, 0)),   # w1, VMEM-resident
            pl.BlockSpec((Hp, Cp), lambda i: (0, 0)),   # w2, VMEM-resident
        ],
        out_specs=pl.BlockSpec((TB, Cp), lambda i: (i, 0)),
        compiler_params=pltpu.CompilerParams(
            dimension_semantics=("parallel",)),
        cost_estimate=pl.CostEstimate(
            flops=flops,
            transcendentals=Bp * Cp,
            bytes_accessed=bytes_accessed),
    )(x_p, w1_p, w2_p)

    return out_p[:B, :C]


def init_params(key, input_dim):
    """PyTorch-default Linear init (bias-free), stored transposed as (in, out)."""
    hidden = input_dim // 16
    k1, k2 = jax.random.split(key)
    bound1 = 1.0 / (input_dim ** 0.5)
    bound2 = 1.0 / (hidden ** 0.5)
    w1 = jax.random.uniform(k1, (input_dim, hidden), jnp.float32, -bound1, bound1)
    w2 = jax.random.uniform(k2, (hidden, input_dim), jnp.float32, -bound2, bound2)
    return w1, w2


def attention_block_ref(x, w1, w2):
    """Pure-JAX reference of the AttentionBlock forward."""
    h = jnp.maximum(x @ w1, 0.0)
    g = jax.nn.sigmoid(h @ w2)
    return x * g


if __name__ == "__main__":
    key = jax.random.PRNGKey(0)
    k_x, k_w = jax.random.split(key)

    # Small but non-trivial: exercises the batch-tile grid (2 tiles of 256)
    # and both the batch- and hidden-dim zero-padding paths.
    B, C = 300, 256                      # input_dim=256 -> bottleneck 16
    x = jax.random.normal(k_x, (B, C), jnp.float32)
    w1, w2 = init_params(k_w, C)

    out = attention_block_forward(x, w1, w2, block_b=256)
    out = jax.block_until_ready(out)

    ref = attention_block_ref(x, w1, w2)
    assert out.shape == (B, C), out.shape
    max_err = float(jnp.max(jnp.abs(out - ref)))
    assert jnp.allclose(out, ref, atol=1e-5, rtol=1e-5), max_err

    print("KERNEL_OK")
</pallas_src>

<mosaic_0001>
module attributes {stable_mosaic.version = 11 : i64} {
  func.func @attention_gate_kernel(%arg0: i32, %arg1: memref<256x256xf32, #tpu.memory_space<vmem>>, %arg2: memref<256x128xf32, #tpu.memory_space<vmem>>, %arg3: memref<128x256xf32, #tpu.memory_space<vmem>>, %arg4: memref<256x256xf32, #tpu.memory_space<vmem>>) attributes {dimension_semantics = [#tpu.dimension_semantics<parallel>], iteration_bounds = array<i64: 2>, scalar_prefetch = 0 : i64, scratch_operands = 0 : i64, tpu.core_type = #tpu.core_type<tc>, window_params = [{transform_indices = @transform_0, window_bounds = array<i64: 256, 256>}, {pipeline_mode = #tpu.pipeline_mode<synchronous>, transform_indices = @transform_1, window_bounds = array<i64: 256, 128>}, {pipeline_mode = #tpu.pipeline_mode<synchronous>, transform_indices = @transform_2, window_bounds = array<i64: 128, 256>}, {transform_indices = @transform_3, window_bounds = array<i64: 256, 256>}]} {
    %c0 = arith.constant 0 : index
    %c0_0 = arith.constant 0 : index
    %0 = vector.load %arg1[%c0, %c0_0] : memref<256x256xf32, #tpu.memory_space<vmem>>, vector<256x256xf32>
    %c0_1 = arith.constant 0 : index
    %c0_2 = arith.constant 0 : index
    %1 = vector.load %arg2[%c0_1, %c0_2] : memref<256x128xf32, #tpu.memory_space<vmem>>, vector<256x128xf32>
    %cst = arith.constant dense<0.000000e+00> : vector<256x128xf32>
    %2 = tpu.matmul %0, %1, %cst {dimension_numbers = #tpu.dot_dimension_numbers<[1], [0], [0], [1], [0, 0, 1, 1], [], []>} : vector<256x256xf32>, vector<256x128xf32>, vector<256x128xf32> -> vector<256x128xf32>
    %cst_3 = arith.constant 0.000000e+00 : f32
    %3 = vector.broadcast %cst_3 : f32 to vector<256x128xf32>
    %4 = arith.maximumf %2, %3 : vector<256x128xf32>
    %c0_4 = arith.constant 0 : index
    %c0_5 = arith.constant 0 : index
    %5 = vector.load %arg3[%c0_4, %c0_5] : memref<128x256xf32, #tpu.memory_space<vmem>>, vector<128x256xf32>
    %cst_6 = arith.constant dense<0.000000e+00> : vector<256x256xf32>
    %6 = tpu.matmul %4, %5, %cst_6 {dimension_numbers = #tpu.dot_dimension_numbers<[1], [0], [0], [1], [0, 0, 1, 1], [], []>} : vector<256x128xf32>, vector<128x256xf32>, vector<256x256xf32> -> vector<256x256xf32>
    %7 = arith.negf %6 : vector<256x256xf32>
    %8 = math.exp %7 : vector<256x256xf32>
    %cst_7 = arith.constant 1.000000e+00 : f32
    %9 = vector.broadcast %cst_7 : f32 to vector<256x256xf32>
    %10 = arith.addf %9, %8 : vector<256x256xf32>
    %11 = arith.divf %9, %10 : vector<256x256xf32>
    %12 = arith.mulf %0, %11 : vector<256x256xf32>
    %c0_8 = arith.constant 0 : index
    %c0_9 = arith.constant 0 : index
    %13 = vector.load %arg4[%c0_8, %c0_9] : memref<256x256xf32, #tpu.memory_space<vmem>>, vector<256x256xf32>
    tpu.vector_store %arg4[%c0_8, %c0_9], %12 {strides = array<i32>} : memref<256x256xf32, #tpu.memory_space<vmem>>, vector<256x256xf32>,
    return
  }
  func.func @transform_0(%arg0: i32) -> (i32, i32) {
    %c0_i32 = arith.constant 0 : i32
    %c0_i32_0 = arith.constant 0 : i32
    return %arg0, %c0_i32 : i32, i32
  }
  func.func @transform_1(%arg0: i32) -> (i32, i32) {
    %c0_i32 = arith.constant 0 : i32
    %c0_i32_0 = arith.constant 0 : i32
    %c0_i32_1 = arith.constant 0 : i32
    return %c0_i32, %c0_i32_0 : i32, i32
  }
  func.func @transform_2(%arg0: i32) -> (i32, i32) {
    %c0_i32 = arith.constant 0 : i32
    %c0_i32_0 = arith.constant 0 : i32
    %c0_i32_1 = arith.constant 0 : i32
    return %c0_i32, %c0_i32_0 : i32, i32
  }
  func.func @transform_3(%arg0: i32) -> (i32, i32) {
    %c0_i32 = arith.constant 0 : i32
    %c0_i32_0 = arith.constant 0 : i32
    return %arg0, %c0_i32 : i32, i32
  }
}

</mosaic_0001>

<bundles_post_ra>
// kernel: tpu_custom_call.1
= control target key start
LH: loop header
LB: loop body
LE: loop exit
PB: predicated region body
PF: predicated region fallthrough
CT: control target
= control target key end

     0   :  { %8 = vsyncpa [#allocation3], 0  ;;  %s2770_s0 = inlined_call_operand.hbm [shape: f32[512,256], index: 0, kind: input, shape index: {}]   ;;  %s2771_s1 = inlined_call_operand.hbm [shape: f32[256,128], index: 1, kind: input, shape index: {}]   ;;  %s2772_s2 = inlined_call_operand.hbm [shape: f32[128,256], index: 2, kind: input, shape index: {}]   ;;  %s2773_s3 = inlined_call_operand.hbm [shape: f32[512,256], index: 3, kind: output, shape index: {}]  }
   0x1   :  { %10 = vsyncpa [#allocation3 + $0x1], 0 }
   0x2   :  { %11 = vsyncpa [#allocation6], 0 }
   0x3   :  { %12 = vsyncpa [#allocation4], 0 }
   0x4   :  { %14 = vsyncpa [#allocation4 + $0x1], 0  ;;  %s2212_s12 = smov 0   ;;  %s2214_s13 = smov 0  }
   0x5   :  { %s2216_s14 = smov 0   ;;  %s2218_s15 = smov 0  }
   0x6 LB: > { %s2233_s16 = sadd.s32 4294967295, %s2178_s15   ;;  %s1482_s17 = sadd.s32 4294967294, %s2178_s15   ;;  %s2178_s15 = sphi %s2218_s15, %s2793_s15   ;;  %s2174_s14 = sphi %s2216_s14, %s2792_s14   ;;  %s2170_s13 = sphi %s2214_s13, %s2791_s13   ;;  %s2166_s12 = sphi %s2212_s12, %s2790_s12  }
   0x7   : > { %p40_p0 = scmp.ne.s32.totalorder %s2170_s13, %s2166_s12  ;;  %p2774_p1 = scmp.eq.s32.totalorder %s2233_s16, 0 }
   0x8   : > { %p112_p3 = scmp.eq.s32.totalorder %s1482_s17, 1  ;;  %p1483_p5 = scmp.ge.s32.totalorder %s2178_s15, 1 }
   0x9   : > { %p2242_p4 = por %p2774_p1, %p40_p0  ;;  %p119_p7 = scmp.lt.s32.totalorder %s2178_s15, 3 }
   0xa   : > { %p2247_p6 = por %p112_p3, %p40_p0  ;;  %s2180_s21 = smov [#allocation5]  }
   0xb   : > { %s2777_s18 = scalar_select %p2242_p4, 1, 0 }
   0xc   : > { %s2778_s19 = scalar_select %p2247_p6, 1, 0 }
   0xd   : > { %p2252_p8 = pnand %p1483_p5, %p119_p7  ;;  %s131_s22 = sshll.u32 %s2180_s21, 4  ;;  %s2256_s22 = int_to_ptr.vmem [resolvable:$true] %s131_s22 }
   0xe   : > { %s2181_s24 = smov [#allocation7]   ;;  %s2022_s28 = scalar_lea.hbm %s2771_s1, 4096 }
   0xf   : > { %p1662_p9 = pneg %p2252_p8  ;;  %s144_s25 = sshll.u32 %s2181_s24, 4  ;;  %s2267_s25 = int_to_ptr.vmem [resolvable:$true] %s144_s25 }
  0x10   : > { %p2023_p12 = scmp.ne.s32.totalorder %s2771_s1, %s2022_s28  ;;  %p2029_p5 = scmp.lt.u32.totalorder %s2022_s28, %s2771_s1 }
  0x11   : > { %p2263_p11 = pnand %p1662_p9, %p2774_p1 }
  0x13   : > { %p2024_p13 = pneg %p2263_p11 }
  0x15   : > { %p2025_p0 = pnand %p2024_p13, %p2023_p12 }
  0x17   : > { %p2026_p3 = pneg %p2025_p0 }
  0x19   : > { %p2031_p7 = pnand %p2029_p5, %p2026_p3 }
  0x1b   : > { %2034 = shalt.err (!%p2031_p7)
}
  0x1c   : > { %s2035_s6 = scalar_lea.vmem %s2256_s22, 4096  ;;  %p2043_p2 = scmp.lt.s32.totalorder %s2256_s22, %s2256_s22 }
  0x1d   : > { %p2036_p9 = scmp.ne.s32.totalorder %s2256_s22, %s2035_s6  ;;  %p2044_p12 = scmp.lt.s32.totalorder %s2035_s6, %s2035_s6 }
  0x1f   : > { %p2038_p10 = pnand %p2036_p9, %p2024_p13  ;;  %p2045_p0 = por %p2044_p12, %p2043_p2 }
  0x21   : > { %p2039_p1 = pneg %p2038_p10 }
  0x23   : > { %p2046_p6 = pnand %p2045_p0, %p2039_p1 }
  0x25   : > { %2049 = shalt.err (!%p2046_p6)
}
  0x26   : > { %s2182_s7 = smov 128   ;;  %s2183_s8 = smov 8  }
  0x27   : > { %1665 = dma.hbm_to_vmem [thread:$0]  (!%p2263_p11), %s2771_s1, 4096, %s2256_s22, [#allocation6], %s2182_s7, %s2182_s7, %s2183_s8  }
  0x28   : > { %s2050_s21 = scalar_lea.hbm %s2772_s2, 4096 }
  0x29   : > { %p2051_p2 = scmp.ne.s32.totalorder %s2772_s2, %s2050_s21  ;;  %p2057_p10 = scmp.lt.u32.totalorder %s2050_s21, %s2772_s2 }
  0x2b   : > { %p2053_p1 = pnand %p2051_p2, %p2024_p13 }
  0x2d   : > { %p2054_p6 = pneg %p2053_p1 }
  0x2f   : > { %p2059_p3 = pnand %p2057_p10, %p2054_p6 }
  0x31   : > { %2062 = shalt.err (!%p2059_p3)
}
  0x32   : > { %s2063_s22 = scalar_lea.vmem %s2267_s25, 4096  ;;  %p2071_p12 = scmp.lt.s32.totalorder %s2267_s25, %s2267_s25 }
  0x33   : > { %p2064_p5 = scmp.ne.s32.totalorder %s2267_s25, %s2063_s22  ;;  %p2072_p0 = scmp.lt.s32.totalorder %s2063_s22, %s2063_s22 }
  0x35   : > { %p2066_p7 = pnand %p2064_p5, %p2024_p13  ;;  %p2073_p2 = por %p2072_p0, %p2071_p12 }
  0x37   : > { %p2067_p9 = pneg %p2066_p7 }
  0x39   : > { %p2074_p1 = pnand %p2073_p2, %p2067_p9 }
  0x3b   : > { %2077 = shalt.err (!%p2074_p1)
}
  0x3c   : > { %s2184_s29 = smov 256   ;;  %s2185_s30 = smov 16  }
  0x3d   : > { %1668 = dma.hbm_to_vmem [thread:$0]  (!%p2263_p11), %s2772_s2, 4096, %s2267_s25, [#allocation6], %s2184_s29, %s2184_s29, %s2185_s30  }
  0x3e   : > { %s2325_s6 = sadd.s32 1, %s2178_s15   ;;  %s27_s8 = sadd.s32 1, %s2174_s14 }
  0x3f   : > { %s24_s7 = ssub.s32 %s2178_s15, %s2325_s6  ;;  %p34_p6 = scmp.ne.s32.totalorder %s2174_s14, %s2170_s13 }
  0x40   : > { %p25_p13 = scmp.eq.s32.totalorder %s24_s7, 0  ;;  %p35_p10 = scmp.eq.s32.totalorder %s2178_s15, 0 }
  0x41   : > { %p2781_p5 = scmp.eq.s32.totalorder %s2233_s16, 1  ;;  %p1679_p9 = scmp.lt.s32.totalorder %s2178_s15, 2 }
  0x42   : > { %s2334_s9 = scalar_select %p25_p13, %s2174_s14, %s27_s8  }
  0x43   : > { %p36_p3 = por %p35_p10, %p34_p6  ;;  %p2338_p7 = por %p2781_p5, %p34_p6 }
  0x44   : > { %s158_s10 = sand.u32 1, %s2174_s14   ;;  %s1567_s25 = sshll.u32 %s2178_s15, 13 }
  0x45   : > { %s2782_s23 = scalar_select %p2338_p7, 1, 0 }
  0x46   : > { %s1487_s11 = sshll.u32 %s158_s10, 9  ;;  %s2348_s24 = scalar_lea.hbm %s2770_s0, %s1567_s25 }
  0x47   : > { %s162_s26 = scalar_lea.vmem [#allocation2], %s1487_s11  ;;  %p2352_p11 = pnand %p1679_p9, %p36_p3 }
  0x48   : > { %s170_s27 = sshll.u32 %s162_s26, 4  ;;  %s2356_s22 = scalar_lea.sflag [#allocation3], %s158_s10  ;;  %s2350_s27 = int_to_ptr.vmem [resolvable:$true] %s170_s27 }
  0x49   : > { %s2078_s4 = scalar_lea.hbm %s2348_s24, 8192  ;;  %p2080_p0 = pneg %p2352_p11 }
  0x4a   : > { %p2079_p12 = scmp.ne.s32.totalorder %s2348_s24, %s2078_s4  ;;  %s2083_s8 = scalar_lea.hbm %s2770_s0, 16384 }
  0x4b   : > { %p2084_p13 = scmp.lt.u32.totalorder %s2348_s24, %s2770_s0  ;;  %p2085_p6 = scmp.lt.u32.totalorder %s2083_s8, %s2078_s4 }
  0x4c   : > { %p2081_p2 = pnand %p2080_p0, %p2079_p12  ;;  %p2087_p3 = scmp.lt.u32.totalorder %s2078_s4, %s2348_s24 }
  0x4d   : > { %p2086_p10 = por %p2085_p6, %p2084_p13 }
  0x4e   : > { %p2082_p1 = pneg %p2081_p2 }
  0x4f   : > { %p2088_p5 = por %p2087_p3, %p2086_p10 }
  0x51   : > { %p2089_p9 = pnand %p2088_p5, %p2082_p1 }
  0x53   : > { %2092 = shalt.err (!%p2089_p9)
}
  0x54   : > { %s2093_s10 = scalar_lea.vmem %s2350_s27, 8192  ;;  %s2186_s17 = smov [#allocation2]  }
  0x55   : > { %p2094_p12 = scmp.ne.s32.totalorder %s2350_s27, %s2093_s10  ;;  %s2098_s21 = sshll.u32 %s2186_s17, 4  ;;  %s2099_s21 = int_to_ptr.vmem [resolvable:$false] %s2098_s21 }
  0x56   : > { %s2100_s26 = scalar_lea.vmem %s2099_s21, 16384  ;;  %p2101_p4 = scmp.lt.s32.totalorder %s2350_s27, %s2099_s21 }
  0x57   : > { %p2096_p2 = pnand %p2094_p12, %p2080_p0  ;;  %p2102_p13 = scmp.lt.s32.totalorder %s2100_s26, %s2093_s10 }
  0x59   : > { %p2097_p7 = pneg %p2096_p2  ;;  %p2103_p6 = por %p2102_p13, %p2101_p4 }
  0x5b   : > { %p2104_p10 = pnand %p2103_p6, %p2097_p7 }
  0x5d   : > { %2107 = shalt.err (!%p2104_p10)
}
  0x5e   : > { %1672 = dma.hbm_to_vmem [thread:$0]  (!%p2352_p11), %s2348_s24, 8192, %s2350_s27, %s2356_s22, %s2184_s29, %s2184_s29, %s2185_s30  }
  0x5f   : > { %182 = sbr.rel (%p2252_p8) target bundleno = 768 (0x300), region = 32  ;;  %s2390_s4 = sand.u32 (!%p2252_p8), 1, %s2170_s13  }
  0x60   : > { %s1492_s5 = sshll.u32 (!%p2252_p8), %s2390_s4, 9  ;;  %s185_s7 = scalar_lea.sflag (!%p2252_p8), [#allocation3], %s2390_s4 }
  0x61   : > { %s2396_s28 = scalar_lea.vmem (!%p2252_p8), [#allocation2], %s1492_s5  ;;  %p2784_p4 = scmp.ne.s32.totalorder (!%p2252_p8), %s2777_s18, 0 }
  0x66   : > { %2153 = dma.done.wait (%p2784_p4), %s185_s7, 8192  }
  0x67   : > { %2155 = vsyncadd (%p2784_p4), %s185_s7, 4294959104  ;;  %p2785_p7 = scmp.eq.s32.totalorder %s2233_s16, 0 }
  0x69   : > { %2157 = dma.done.wait (%p2785_p7), [#allocation6], 8192   ;;  %p2786_p8 = pmov %p2785_p7 }
  0x6a   : > { %v2187_v0 = vmov 0.0|0.0   ;;  %v285_v1 = vld [vmem:[#allocation5] sm:$0xff]  ;;  %v286_v2 = vld [vmem:[#allocation5 + $0x8] sm:$0xff]  ;;  %v287_v3 = vld [vmem:[#allocation5 + $0x10] sm:$0xff]  ;;  %s2591_s18 = scalar_lea.vmem [#allocation8], %s1492_s5  ;;  %s1569_s20 = sshll.u32 %s2233_s16, 13 }
  0x6b   : > { %2159 = vsyncadd (%p2786_p8), [#allocation6], 4294959104  ;;  %1570 = vmatprep.subr.bf16.mxu0 %v2187_v0  ;;  %v1571_v4 = vpack.c.bf16 %v286_v2, %v285_v1  ;;  %v288_v5 = vld [vmem:[#allocation5 + $0x18] sm:$0xff]  ;;  %v289_v7 = vld [vmem:[#allocation5 + $0x20] sm:$0xff]  ;;  %s1390_s29 = sshll.u32 %s2591_s18, 4  ;;  %s2722_s27 = scalar_lea.hbm %s2773_s3, %s1569_s20  ;;  %s2724_s29 = int_to_ptr.vmem [resolvable:$true] %s1390_s29 }
  0x6c   : > { %v1574_v6 = vpack.c.bf16 %v288_v5, %v287_v3  ;;  %v290_v8 = vld [vmem:[#allocation5 + $0x28] sm:$0xff]  ;;  %v291_v10 = vld [vmem:[#allocation5 + $0x30] sm:$0xff]  ;;  %v292_v11 = vld [vmem:[#allocation5 + $0x38] sm:$0xff]  ;;  %s1376_s16 = scalar_lea.sflag [#allocation4], %s2390_s4  ;;  %s2108_s22 = scalar_lea.vmem %s2724_s29, 8192 }
  0x6d   : > { %1572 = vmatpush1.bf16.msra.mxu0 %v1571_v4  ;;  %v1577_v9 = vpack.c.bf16 %v290_v8, %v289_v7  ;;  %v2410_v12 = vld [vmem:[%s2396_s28 + $0x8] sm:$0xff]  ;;  %v1580_v13 = vpack.c.bf16 %v292_v11, %v291_v10  ;;  %v293_v14 = vld [vmem:[#allocation5 + $0x40] sm:$0xff]  ;;  %v295_v17 = vld [vmem:[#allocation5 + $0x50] sm:$0xff]  ;;  %p2109_p11 = scmp.ne.s32.totalorder %s2724_s29, %s2108_s22  ;;  %p2787_p0 = scmp.ne.s32.totalorder %s2782_s23, 0 }
  0x6e   : > { %1573 = vmatprep.subr.bf16.mxu0 %v2187_v0  ;;  %381 = vmatprep.mubr.f32.mxu0 %v2410_v12  ;;  %v294_v15 = vld [vmem:[#allocation5 + $0x48] sm:$0xff]  ;;  %v296_v18 = vld [vmem:[#allocation5 + $0x58] sm:$0xff]  ;;  %v297_v20 = vld [vmem:[#allocation5 + $0x60] sm:$0xff]  ;;  %s2189_s8 = smov [#allocation8]  }
  0x6f   : > { %v1583_v16 = vpack.c.bf16 %v294_v15, %v293_v14  ;;  %v1586_v19 = vpack.c.bf16 %v296_v18, %v295_v17  ;;  %v298_v21 = vld [vmem:[#allocation5 + $0x68] sm:$0xff]  ;;  %v299_v23 = vld [vmem:[#allocation5 + $0x70] sm:$0xff]  ;;  %v300_v24 = vld [vmem:[#allocation5 + $0x78] sm:$0xff]  ;;  %p2110_p1 = pnand %p2109_p11, %p2787_p0  ;;  %s2112_s11 = sshll.u32 %s2189_s8, 4  ;;  %s2113_s11 = int_to_ptr.vmem [resolvable:$false] %s2112_s11 }
  0x70   : > { %v1589_v22 = vpack.c.bf16 %v298_v21, %v297_v20  ;;  %v1592_v25 = vpack.c.bf16 %v300_v24, %v299_v23  ;;  %v301_v26 = vld [vmem:[#allocation5 + $0x80] sm:$0xff]  ;;  %v302_v27 = vld [vmem:[#allocation5 + $0x88] sm:$0xff]  ;;  %v303_v29 = vld [vmem:[#allocation5 + $0x90] sm:$0xff]  ;;  %s2114_s25 = scalar_lea.vmem %s2113_s11, 16384  ;;  %p2115_p5 = scmp.lt.s32.totalorder %s2724_s29, %s2113_s11 }
  0x71   : > { %1575 = vmatpush1.bf16.msra.mxu0 %v1574_v6  ;;  %v1595_v28 = vpack.c.bf16 %v302_v27, %v301_v26  ;;  %v304_v30 = vld [vmem:[#allocation5 + $0x98] sm:$0xff]  ;;  %v305_v32 = vld [vmem:[#allocation5 + $0xa0] sm:$0xff]  ;;  %v306_v33 = vld [vmem:[#allocation5 + $0xa8] sm:$0xff]  ;;  %p2111_p3 = pneg %p2110_p1  ;;  %p2116_p9 = scmp.lt.s32.totalorder %s2114_s25, %s2108_s22 }
  0x72   : > { %1576 = vmatprep.subr.bf16.mxu0 %v2187_v0  ;;  %v1598_v31 = vpack.c.bf16 %v304_v30, %v303_v29  ;;  %v1601_v34 = vpack.c.bf16 %v306_v33, %v305_v32  ;;  %v307_v35 = vld [vmem:[#allocation5 + $0xb0] sm:$0xff]  ;;  %v308_v36 = vld [vmem:[#allocation5 + $0xb8] sm:$0xff]  ;;  %v309_v38 = vld [vmem:[#allocation5 + $0xc0] sm:$0xff] }
  0x73   : > { %v1604_v37 = vpack.c.bf16 %v308_v36, %v307_v35  ;;  %v310_v39 = vld [vmem:[#allocation5 + $0xc8] sm:$0xff]  ;;  %v311_v41 = vld [vmem:[#allocation5 + $0xd0] sm:$0xff]  ;;  %v312_v42 = vld [vmem:[#allocation5 + $0xd8] sm:$0xff]  ;;  %p2117_p12 = por %p2116_p9, %p2115_p5 }
  0x74   : > { %v1607_v40 = vpack.c.bf16 %v310_v39, %v309_v38  ;;  %v1610_v43 = vpack.c.bf16 %v312_v42, %v311_v41  ;;  %v313_v44 = vld [vmem:[#allocation5 + $0xe0] sm:$0xff]  ;;  %v314_v45 = vld [vmem:[#allocation5 + $0xe8] sm:$0xff]  ;;  %v315_v47 = vld [vmem:[#allocation5 + $0xf0] sm:$0xff] }
  0x75   : > { %1578 = vmatpush1.bf16.msra.mxu0 %v1577_v9  ;;  %v1613_v46 = vpack.c.bf16 %v314_v45, %v313_v44  ;;  %v316_v48 = vld [vmem:[#allocation5 + $0xf8] sm:$0xff]  ;;  %v2427_v50 = vld [vmem:[%s2396_s28] sm:$0xff]  ;;  %v575_v52 = vld [vmem:[#allocation7 + $0x8] sm:$0xff]  ;;  %p2118_p2 = pnand %p2117_p12, %p2111_p3 }
  0x76   : > { %1579 = vmatprep.subr.bf16.mxu0 %v2187_v0  ;;  %v1616_v49 = vpack.c.bf16 %v316_v48, %v315_v47  ;;  %v2430_v51 = vld [vmem:[%s2396_s28 + $0x18] sm:$0xff]  ;;  %v574_v54 = vld [vmem:[#allocation7] sm:$0xff]  ;;  %v576_v56 = vld [vmem:[#allocation7 + $0x10] sm:$0xff] }
  0x77   : > { %v577_v53 = vld [vmem:[#allocation7 + $0x18] sm:$0xff]  ;;  %v579_v57 = vld [vmem:[#allocation7 + $0x28] sm:$0xff]  ;;  %v1620_v59 = vpack.c.bf16 %v576_v56, %v574_v54  ;;  %v578_v61 = vld [vmem:[#allocation7 + $0x20] sm:$0xff] }
  0x78   : > { %v1618_v55 = vpack.c.bf16 %v577_v53, %v575_v52  ;;  %v581_v58 = vld [vmem:[#allocation7 + $0x38] sm:$0xff]  ;;  %v580_v62 = vld [vmem:[#allocation7 + $0x30] sm:$0xff]  ;;  %v583_v63 = vld [vmem:[#allocation7 + $0x48] sm:$0xff] }
  0x79   : > { %1581 = vmatpush1.bf16.msra.mxu0 %v1580_v13  ;;  %v1622_v60 = vpack.c.bf16 %v581_v58, %v579_v57  ;;  %v1624_v1 = vpack.c.bf16 %v580_v62, %v578_v61  ;;  %v2435_v2 = vld [vmem:[%s2396_s28 + $0x10] sm:$0xff]  ;;  %v582_v4 = vld [vmem:[#allocation7 + $0x40] sm:$0xff]  ;;  %v2438_v6 = vld [vmem:[%s2396_s28 + $0x28] sm:$0xff] }
  0x7a   : > { %1582 = vmatprep.subr.bf16.mxu0 %v2187_v0  ;;  %1619 = vmatprep.subr.bf16.mxu1 %v1618_v55  ;;  %v584_v5 = vld [vmem:[#allocation7 + $0x50] sm:$0xff]  ;;  %v587_v7 = vld [vmem:[#allocation7 + $0x68] sm:$0xff]  ;;  %v589_v8 = vld [vmem:[#allocation7 + $0x78] sm:$0xff] }
  0x7b   : > { %1621 = vmatpush1.bf16.msra.mxu1 %v1620_v59  ;;  %v1628_v9 = vpack.c.bf16 %v584_v5, %v582_v4  ;;  %v2443_v10 = vld [vmem:[%s2396_s28 + $0x20] sm:$0xff]  ;;  %v1630_v11 = vpack.c.bf16 %v589_v8, %v587_v7  ;;  %v588_v14 = vld [vmem:[#allocation7 + $0x70] sm:$0xff]  ;;  %v2446_v15 = vld [vmem:[%s2396_s28 + $0x38] sm:$0xff] }
  0x7c   : > { %1623 = vmatprep.subr.bf16.mxu1 %v1622_v60  ;;  %v586_v13 = vld [vmem:[#allocation7 + $0x60] sm:$0xff]  ;;  %v593_v17 = vld [vmem:[#allocation7 + $0x98] sm:$0xff]  ;;  %v2454_v23 = vld [vmem:[%s2396_s28 + $0x48] sm:$0xff] }
  0x7d   : > { %1584 = vmatpush1.bf16.msra.mxu0 %v1583_v16  ;;  %v591_v16 = vld [vmem:[#allocation7 + $0x88] sm:$0xff]  ;;  %v1632_v18 = vpack.c.bf16 %v588_v14, %v586_v13  ;;  %v590_v21 = vld [vmem:[#allocation7 + $0x80] sm:$0xff]  ;;  %v596_v30 = vld [vmem:[#allocation7 + $0xb0] sm:$0xff] }
  0x7e   : > { %1585 = vmatprep.subr.bf16.mxu0 %v2187_v0  ;;  %v1634_v20 = vpack.c.bf16 %v593_v17, %v591_v16  ;;  %v595_v24 = vld [vmem:[#allocation7 + $0xa8] sm:$0xff]  ;;  %v2459_v27 = vld [vmem:[%s2396_s28 + $0x40] sm:$0xff]  ;;  %v601_v33 = vld [vmem:[#allocation7 + $0xd8] sm:$0xff] }
  0x7f   : > { %1625 = vmatpush1.bf16.msra.mxu1 %v1624_v1  ;;  %v594_v29 = vld [vmem:[#allocation7 + $0xa0] sm:$0xff]  ;;  %v599_v32 = vld [vmem:[#allocation7 + $0xc8] sm:$0xff]  ;;  %v2467_v35 = vld [vmem:[%s2396_s28 + $0x50] sm:$0xff] }
  0x80   : > { %v1642_v36 = vpack.c.bf16 %v601_v33, %v599_v32  ;;  %v600_v38 = vld [vmem:[#allocation7 + $0xd0] sm:$0xff]  ;;  %v2470_v39 = vld [vmem:[%s2396_s28 + $0x68] sm:$0xff]  ;;  %v605_v41 = vld [vmem:[#allocation7 + $0xf8] sm:$0xff] }
  0x81   : > { %1587 = vmatpush1.bf16.msra.mxu0 %v1586_v19  ;;  %v2451_v19 = vld [vmem:[%s2396_s28 + $0x30] sm:$0xff]  ;;  %v2478_v45 = vld [vmem:[%s2396_s28 + $0x78] sm:$0xff]  ;;  %v2486_v47 = vld [vmem:[%s2396_s28 + $0x88] sm:$0xff] }
  0x82   : > { %1588 = vmatprep.subr.bf16.mxu0 %v2187_v0  ;;  %v2491_v48 = vld [vmem:[%s2396_s28 + $0x80] sm:$0xff]  ;;  %v2499_v52 = vld [vmem:[%s2396_s28 + $0x90] sm:$0xff]  ;;  %v2502_v53 = vld [vmem:[%s2396_s28 + $0xa8] sm:$0xff] }
  0x83   : > { %v2507_v54 = vld [vmem:[%s2396_s28 + $0xa0] sm:$0xff]  ;;  %v244_v55 = vld [vmem:[%s2396_s28 + $0xb8] sm:$0xff]  ;;  %v2512_v56 = vld [vmem:[%s2396_s28 + $0xb0] sm:$0xff] }
  0x84   : > { %v246_v57 = vld [vmem:[%s2396_s28 + $0xc8] sm:$0xff]  ;;  %v245_v58 = vld [vmem:[%s2396_s28 + $0xc0] sm:$0xff]  ;;  %v248_v59 = vld [vmem:[%s2396_s28 + $0xd8] sm:$0xff] }
  0x85   : > { %1590 = vmatpush1.bf16.msra.mxu0 %v1589_v22  ;;  %v592_v22 = vld [vmem:[#allocation7 + $0x90] sm:$0xff]  ;;  %v250_v61 = vld [vmem:[%s2396_s28 + $0xe8] sm:$0xff]  ;;  %v249_v62 = vld [vmem:[%s2396_s28 + $0xe0] sm:$0xff] }
  0x86   : > { %1591 = vmatprep.subr.bf16.mxu0 %v2187_v0  ;;  %v1636_v26 = vpack.c.bf16 %v592_v22, %v590_v21  ;;  %v247_v60 = vld [vmem:[%s2396_s28 + $0xd0] sm:$0xff]  ;;  %v254_v1 = vld [vmem:[%s2396_s28 + $0x108] sm:$0xff]  ;;  %v256_v4 = vld [vmem:[%s2396_s28 + $0x118] sm:$0xff] }
  0x87   : > { %v255_v5 = vld [vmem:[%s2396_s28 + $0x110] sm:$0xff]  ;;  %v258_v7 = vld [vmem:[%s2396_s28 + $0x128] sm:$0xff]  ;;  %v257_v8 = vld [vmem:[%s2396_s28 + $0x120] sm:$0xff] }
  0x88   : > { %v262_v13 = vld [vmem:[%s2396_s28 + $0x148] sm:$0xff]  ;;  %v261_v14 = vld [vmem:[%s2396_s28 + $0x140] sm:$0xff]  ;;  %v264_v16 = vld [vmem:[%s2396_s28 + $0x158] sm:$0xff] }
  0x89   : > { %1593 = vmatpush1.bf16.msra.mxu0 %v1592_v25  ;;  %v597_v25 = vld [vmem:[#allocation7 + $0xb8] sm:$0xff]  ;;  %v602_v17 = vld [vmem:[#allocation7 + $0xe0] sm:$0xff]  ;;  %v266_v22 = vld [vmem:[%s2396_s28 + $0x168] sm:$0xff] }
  0x8a   : > { %1594 = vmatprep.subr.bf16.mxu0 %v2187_v0  ;;  %v272_v32 = vld [vmem:[%s2396_s28 + $0x198] sm:$0xff]  ;;  %v271_v33 = vld [vmem:[%s2396_s28 + $0x190] sm:$0xff] }
  0x8d   : > { %1596 = vmatpush1.bf16.msra.mxu0 %v1595_v28  ;;  %v1638_v28 = vpack.c.bf16 %v597_v25, %v595_v24  ;;  %v265_v24 = vld [vmem:[%s2396_s28 + $0x160] sm:$0xff]  ;;  %v2188_v25 = vmov 0.0  }
  0x8e   : > { %1597 = vmatprep.subr.bf16.mxu0 %v2187_v0  ;;  %670 = vmatprep.mubr.f32.mxu1 %v2188_v25 }
  0x91   : > { %1599 = vmatpush1.bf16.msra.mxu0 %v1598_v31  ;;  %v2462_v31 = vld [vmem:[%s2396_s28 + $0x58] sm:$0xff] }
  0x92   : > { %1600 = vmatprep.subr.bf16.mxu0 %v2187_v0 }
  0x95   : > { %1602 = vmatpush1.bf16.msra.mxu0 %v1601_v34  ;;  %v1640_v34 = vpack.c.bf16 %v596_v30, %v594_v29  ;;  %v270_v29 = vld [vmem:[%s2396_s28 + $0x188] sm:$0xff]  ;;  %v269_v30 = vld [vmem:[%s2396_s28 + $0x180] sm:$0xff] }
  0x96   : > { %1603 = vmatprep.subr.bf16.mxu0 %v2187_v0 }
  0x99   : > { %1605 = vmatpush1.bf16.msra.mxu0 %v1604_v37  ;;  %v598_v37 = vld [vmem:[#allocation7 + $0xc0] sm:$0xff] }
  0x9a   : > { %1606 = vmatprep.subr.bf16.mxu0 %v2187_v0  ;;  %v1644_v42 = vpack.c.bf16 %v600_v38, %v598_v37  ;;  %v276_v37 = vld [vmem:[%s2396_s28 + $0x1b8] sm:$0xff]  ;;  %v275_v38 = vld [vmem:[%s2396_s28 + $0x1b0] sm:$0xff] }
  0x9d   : > { %1608 = vmatpush1.bf16.msra.mxu0 %v1607_v40  ;;  %v603_v40 = vld [vmem:[#allocation7 + $0xe8] sm:$0xff] }
  0x9e   : > { %1609 = vmatprep.subr.bf16.mxu0 %v2187_v0  ;;  %v1646_v44 = vpack.c.bf16 %v605_v41, %v603_v40  ;;  %v278_v40 = vld [vmem:[%s2396_s28 + $0x1c8] sm:$0xff]  ;;  %v277_v41 = vld [vmem:[%s2396_s28 + $0x1c0] sm:$0xff] }
  0xa1   : > { %1611 = vmatpush1.bf16.msra.mxu0 %v1610_v43  ;;  %v2475_v43 = vld [vmem:[%s2396_s28 + $0x60] sm:$0xff] }
  0xa2   : > { %1612 = vmatprep.subr.bf16.mxu0 %v2187_v0 }
  0xa5   : > { %1614 = vmatpush1.bf16.msra.mxu0 %v1613_v46  ;;  %v2483_v46 = vld [vmem:[%s2396_s28 + $0x70] sm:$0xff] }
  0xa6   : > { %1615 = vmatprep.subr.bf16.mxu0 %v2187_v0  ;;  %v585_v0 = vld [vmem:[#allocation7 + $0x58] sm:$0xff] }
  0xa7   : > { %v1626_v3 = vpack.c.bf16 %v585_v0, %v583_v63  ;;  %v252_v63 = vld [vmem:[%s2396_s28 + $0xf8] sm:$0xff]  ;;  %v251_v0 = vld [vmem:[%s2396_s28 + $0xf0] sm:$0xff] }
  0xa9   : > { %1617 = vmatpush1.bf16.msra.mxu0 %v1616_v49  ;;  %1627 = vmatprep.subr.bf16.mxu1 %v1626_v3  ;;  %v2494_v49 = vld [vmem:[%s2396_s28 + $0x98] sm:$0xff]  ;;  %v253_v3 = vld [vmem:[%s2396_s28 + $0x100] sm:$0xff] }
  0xaa   : > { %1629 = vmatpush1.bf16.msra.mxu1 %v1628_v9  ;;  %v260_v9 = vld [vmem:[%s2396_s28 + $0x138] sm:$0xff] }
  0xab   : > { %1631 = vmatprep.subr.bf16.mxu1 %v1630_v11  ;;  %v259_v11 = vld [vmem:[%s2396_s28 + $0x130] sm:$0xff] }
  0xac   : > { %382 = vmatmul.mubr.f32.vlgmr.msra.gmra.mrb[0].mxu0 %v2427_v50 }
  0xad   : > { %386 = vmatprep.mubr.f32.mxu0 %v2430_v51 }
  0xae   : > { %1633 = vmatpush1.bf16.msra.mxu1 %v1632_v18  ;;  %v604_v18 = vld [vmem:[#allocation7 + $0xf0] sm:$0xff] }
  0xaf   : > { %1635 = vmatprep.subr.bf16.mxu1 %v1634_v20  ;;  %v263_v20 = vld [vmem:[%s2396_s28 + $0x150] sm:$0xff]  ;;  %v1648_v21 = vpack.c.bf16 %v604_v18, %v602_v17 }
  0xb0   : > { %387 = vmatmul.mubr.f32.gmra.mrb[2].mxu0 %v2435_v2 }
  0xb1   : > { %391 = vmatprep.mubr.f32.mxu0 %v2438_v6 }
  0xb2   : > { %1637 = vmatpush1.bf16.msra.mxu1 %v1636_v26  ;;  %v268_v26 = vld [vmem:[%s2396_s28 + $0x178] sm:$0xff] }
  0xb3   : > { %1639 = vmatprep.subr.bf16.mxu1 %v1638_v28  ;;  %v267_v28 = vld [vmem:[%s2396_s28 + $0x170] sm:$0xff] }
  0xb4   : > { %392 = vmatmul.mubr.f32.gmra.mrb[4].mxu0 %v2443_v10 }
  0xb5   : > { %396 = vmatprep.mubr.f32.mxu0 %v2446_v15 }
  0xb6   : > { %1641 = vmatpush1.bf16.msra.mxu1 %v1640_v34  ;;  %v274_v34 = vld [vmem:[%s2396_s28 + $0x1a8] sm:$0xff] }
  0xb7   : > { %1643 = vmatprep.subr.bf16.mxu1 %v1642_v36  ;;  %v273_v36 = vld [vmem:[%s2396_s28 + $0x1a0] sm:$0xff] }
  0xb8   : > { %397 = vmatmul.mubr.f32.gmra.mrb[6].mxu0 %v2451_v19 }
  0xb9   : > { %401 = vmatprep.mubr.f32.mxu0 %v2454_v23 }
  0xba   : > { %1645 = vmatpush1.bf16.msra.mxu1 %v1644_v42  ;;  %v280_v42 = vld [vmem:[%s2396_s28 + $0x1d8] sm:$0xff] }
  0xbb   : > { %1647 = vmatprep.subr.bf16.mxu1 %v1646_v44  ;;  %v279_v44 = vld [vmem:[%s2396_s28 + $0x1d0] sm:$0xff] }
  0xbc   : > { %402 = vmatmul.mubr.f32.gmra.mrb[8].mxu0 %v2459_v27 }
  0xbd   : > { %406 = vmatprep.mubr.f32.mxu0 %v2462_v31 }
  0xbe   : > { %1649 = vmatpush1.bf16.msra.mxu1 %v1648_v21 }
  0xc0   : > { %407 = vmatmul.mubr.f32.gmra.mrb[10].mxu0 %v2467_v35 }
  0xc1   : > { %411 = vmatprep.mubr.f32.mxu0 %v2470_v39 }
  0xc4   : > { %412 = vmatmul.mubr.f32.gmra.mrb[12].mxu0 %v2475_v43 }
  0xc5   : > { %416 = vmatprep.mubr.f32.mxu0 %v2478_v45 }
  0xc8   : > { %417 = vmatmul.mubr.f32.gmra.mrb[14].mxu0 %v2483_v46 }
  0xc9   : > { %421 = vmatprep.mubr.f32.mxu0 %v2486_v47 }
  0xcc   : > { %422 = vmatmul.mubr.f32.gmra.mrb[16].mxu0 %v2491_v48 }
  0xcd   : > { %426 = vmatprep.mubr.f32.mxu0 %v2494_v49 }
  0xd0   : > { %427 = vmatmul.mubr.f32.gmra.mrb[18].mxu0 %v2499_v52 }
  0xd1   : > { %431 = vmatprep.mubr.f32.mxu0 %v2502_v53 }
  0xd4   : > { %432 = vmatmul.mubr.f32.gmra.mrb[20].mxu0 %v2507_v54 }
  0xd5   : > { %436 = vmatprep.mubr.f32.mxu0 %v244_v55  ;;  %v282_v55 = vld [vmem:[%s2396_s28 + $0x1e8] sm:$0xff] }
  0xd8   : > { %437 = vmatmul.mubr.f32.gmra.mrb[22].mxu0 %v2512_v56 }
  0xd9   : > { %441 = vmatprep.mubr.f32.mxu0 %v246_v57  ;;  %v281_v57 = vld [vmem:[%s2396_s28 + $0x1e0] sm:$0xff] }
  0xdc   : > { %442 = vmatmul.mubr.f32.gmra.mrb[24].mxu0 %v245_v58  ;;  %v284_v58 = vld [vmem:[%s2396_s28 + $0x1f8] sm:$0xff] }
  0xdd   : > { %446 = vmatprep.mubr.f32.mxu0 %v248_v59  ;;  %v283_v59 = vld [vmem:[%s2396_s28 + $0x1f0] sm:$0xff] }
  0xe0   : > { %447 = vmatmul.mubr.f32.gmra.mrb[26].mxu0 %v247_v60 }
  0xe1   : > { %451 = vmatprep.mubr.f32.mxu0 %v250_v61 }
  0xe4   : > { %452 = vmatmul.mubr.f32.gmra.mrb[28].mxu0 %v249_v62 }
  0xe5   : > { %456 = vmatprep.mubr.f32.mxu0 %v252_v63 }
  0xe8   : > { %457 = vmatmul.mubr.f32.gmra.mrb[30].mxu0 %v251_v0 }
  0xe9   : > { %461 = vmatprep.mubr.f32.mxu0 %v254_v1 }
  0xec   : > { %462 = vmatmul.mubr.f32.gmra.mrb[32].mxu0 %v253_v3 }
  0xed   : > { %466 = vmatprep.mubr.f32.mxu0 %v256_v4 }
  0xf0   : > { %467 = vmatmul.mubr.f32.gmra.mrb[34].mxu0 %v255_v5 }
  0xf1   : > { %471 = vmatprep.mubr.f32.mxu0 %v258_v7 }
  0xf4   : > { %472 = vmatmul.mubr.f32.gmra.mrb[36].mxu0 %v257_v8 }
  0xf5   : > { %476 = vmatprep.mubr.f32.mxu0 %v260_v9 }
  0xf8   : > { %477 = vmatmul.mubr.f32.gmra.mrb[38].mxu0 %v259_v11 }
  0xf9   : > { %481 = vmatprep.mubr.f32.mxu0 %v262_v13 }
  0xfc   : > { %482 = vmatmul.mubr.f32.gmra.mrb[40].mxu0 %v261_v14 }
  0xfd   : > { %486 = vmatprep.mubr.f32.mxu0 %v264_v16 }
 0x100   : > { %487 = vmatmul.mubr.f32.gmra.mrb[42].mxu0 %v263_v20 }
 0x101   : > { %491 = vmatprep.mubr.f32.mxu0 %v266_v22 }
 0x104   : > { %492 = vmatmul.mubr.f32.gmra.mrb[44].mxu0 %v265_v24 }
 0x105   : > { %496 = vmatprep.mubr.f32.mxu0 %v268_v26 }
 0x108   : > { %497 = vmatmul.mubr.f32.gmra.mrb[46].mxu0 %v267_v28 }
 0x109   : > { %501 = vmatprep.mubr.f32.mxu0 %v270_v29 }
 0x10c   : > { %502 = vmatmul.mubr.f32.gmra.mrb[48].mxu0 %v269_v30 }
 0x10d   : > { %506 = vmatprep.mubr.f32.mxu0 %v272_v32 }
 0x110   : > { %507 = vmatmul.mubr.f32.gmra.mrb[50].mxu0 %v271_v33 }
 0x111   : > { %511 = vmatprep.mubr.f32.mxu0 %v274_v34 }
 0x114   : > { %512 = vmatmul.mubr.f32.gmra.mrb[52].mxu0 %v273_v36 }
 0x115   : > { %516 = vmatprep.mubr.f32.mxu0 %v276_v37 }
 0x118   : > { %517 = vmatmul.mubr.f32.gmra.mrb[54].mxu0 %v275_v38 }
 0x119   : > { %521 = vmatprep.mubr.f32.mxu0 %v278_v40 }
 0x11c   : > { %522 = vmatmul.mubr.f32.gmra.mrb[56].mxu0 %v277_v41 }
 0x11d   : > { %526 = vmatprep.mubr.f32.mxu0 %v280_v42 }
 0x120   : > { %527 = vmatmul.mubr.f32.gmra.mrb[58].mxu0 %v279_v44 }
 0x121   : > { %531 = vmatprep.mubr.f32.mxu0 %v282_v55 }
 0x124   : > { %532 = vmatmul.mubr.f32.gmra.mrb[60].mxu0 %v281_v57 }
 0x125   : > { %536 = vmatprep.mubr.f32.mxu0 %v284_v58 }
 0x128   : > { %537 = vmatmul.mubr.f32.gmra.mrb[62].mxu0 %v283_v59 }
 0x17f   : > { %v383_v60 = vpop.f32.mrb[0].mxu0 }
 0x180   : > { %v542_v61 = vmax.f32 %v383_v60, 0.0  ;;  %v385_v62 = vpop.f32.mrb[1].mxu0 }
 0x182   : > { %671 = vmatmul.mubr.f32.vlgmr.msra.gmra.mrb[0].mxu1 %v542_v61 }
 0x183   : > { %v388_v63 = vpop.f32.mrb[2].mxu0  ;;  %676 = vmatprep.mubr.f32.mxu1 %v2188_v25 }
 0x184   : > { %v543_v0 = vmax.f32 %v388_v63, 0.0  ;;  %v390_v1 = vpop.f32.mrb[3].mxu0 }
 0x186   : > { %677 = vmatmul.mubr.f32.gmra.mrb[2].mxu1 %v543_v0 }
 0x187   : > { %v393_v3 = vpop.f32.mrb[4].mxu0  ;;  %682 = vmatprep.mubr.f32.mxu1 %v2188_v25 }
 0x188   : > { %v544_v4 = vmax.f32 %v393_v3, 0.0  ;;  %v395_v5 = vpop.f32.mrb[5].mxu0 }
 0x18a   : > { %683 = vmatmul.mubr.f32.gmra.mrb[4].mxu1 %v544_v4 }
 0x18b   : > { %v398_v7 = vpop.f32.mrb[6].mxu0  ;;  %688 = vmatprep.mubr.f32.mxu1 %v2188_v25 }
 0x18c   : > { %v545_v8 = vmax.f32 %v398_v7, 0.0  ;;  %v400_v9 = vpop.f32.mrb[7].mxu0 }
 0x18e   : > { %689 = vmatmul.mubr.f32.gmra.mrb[6].mxu1 %v545_v8 }
 0x18f   : > { %v403_v11 = vpop.f32.mrb[8].mxu0  ;;  %694 = vmatprep.mubr.f32.mxu1 %v2188_v25 }
 0x190   : > { %v546_v13 = vmax.f32 %v403_v11, 0.0  ;;  %v405_v14 = vpop.f32.mrb[9].mxu0 }
 0x192   : > { %695 = vmatmul.mubr.f32.gmra.mrb[8].mxu1 %v546_v13 }
 0x193   : > { %v408_v16 = vpop.f32.mrb[10].mxu0  ;;  %700 = vmatprep.mubr.f32.mxu1 %v2188_v25 }
 0x194   : > { %v547_v17 = vmax.f32 %v408_v16, 0.0  ;;  %v410_v18 = vpop.f32.mrb[11].mxu0 }
 0x196   : > { %701 = vmatmul.mubr.f32.gmra.mrb[10].mxu1 %v547_v17 }
 0x197   : > { %v413_v20 = vpop.f32.mrb[12].mxu0  ;;  %706 = vmatprep.mubr.f32.mxu1 %v2188_v25 }
 0x198   : > { %v548_v21 = vmax.f32 %v413_v20, 0.0  ;;  %v415_v22 = vpop.f32.mrb[13].mxu0 }
 0x19a   : > { %707 = vmatmul.mubr.f32.gmra.mrb[12].mxu1 %v548_v21 }
 0x19b   : > { %v418_v24 = vpop.f32.mrb[14].mxu0  ;;  %712 = vmatprep.mubr.f32.mxu1 %v2188_v25 }
 0x19c   : > { %v549_v26 = vmax.f32 %v418_v24, 0.0  ;;  %v420_v28 = vpop.f32.mrb[15].mxu0 }
 0x19e   : > { %713 = vmatmul.mubr.f32.gmra.mrb[14].mxu1 %v549_v26 }
 0x19f   : > { %v423_v29 = vpop.f32.mrb[16].mxu0  ;;  %718 = vmatprep.mubr.f32.mxu1 %v2188_v25 }
 0x1a0   : > { %v550_v30 = vmax.f32 %v423_v29, 0.0  ;;  %v425_v32 = vpop.f32.mrb[17].mxu0 }
 0x1a2   : > { %719 = vmatmul.mubr.f32.gmra.mrb[16].mxu1 %v550_v30 }
 0x1a3   : > { %v428_v33 = vpop.f32.mrb[18].mxu0  ;;  %724 = vmatprep.mubr.f32.mxu1 %v2188_v25 }
 0x1a4   : > { %v551_v34 = vmax.f32 %v428_v33, 0.0  ;;  %v430_v36 = vpop.f32.mrb[19].mxu0 }
 0x1a6   : > { %725 = vmatmul.mubr.f32.gmra.mrb[18].mxu1 %v551_v34 }
 0x1a7   : > { %v433_v37 = vpop.f32.mrb[20].mxu0  ;;  %730 = vmatprep.mubr.f32.mxu1 %v2188_v25 }
 0x1a8   : > { %v552_v38 = vmax.f32 %v433_v37, 0.0  ;;  %v435_v40 = vpop.f32.mrb[21].mxu0 }
 0x1aa   : > { %731 = vmatmul.mubr.f32.gmra.mrb[20].mxu1 %v552_v38 }
 0x1ab   : > { %v438_v41 = vpop.f32.mrb[22].mxu0  ;;  %736 = vmatprep.mubr.f32.mxu1 %v2188_v25 }
 0x1ac   : > { %v553_v42 = vmax.f32 %v438_v41, 0.0  ;;  %v440_v44 = vpop.f32.mrb[23].mxu0 }
 0x1ae   : > { %737 = vmatmul.mubr.f32.gmra.mrb[22].mxu1 %v553_v42 }
 0x1af   : > { %v443_v55 = vpop.f32.mrb[24].mxu0  ;;  %742 = vmatprep.mubr.f32.mxu1 %v2188_v25 }
 0x1b0   : > { %v554_v57 = vmax.f32 %v443_v55, 0.0  ;;  %v445_v58 = vpop.f32.mrb[25].mxu0 }
 0x1b2   : > { %743 = vmatmul.mubr.f32.gmra.mrb[24].mxu1 %v554_v57 }
 0x1b3   : > { %v448_v59 = vpop.f32.mrb[26].mxu0  ;;  %748 = vmatprep.mubr.f32.mxu1 %v2188_v25 }
 0x1b4   : > { %v555_v60 = vmax.f32 %v448_v59, 0.0  ;;  %v450_v61 = vpop.f32.mrb[27].mxu0 }
 0x1b6   : > { %749 = vmatmul.mubr.f32.gmra.mrb[26].mxu1 %v555_v60 }
 0x1b7   : > { %v453_v62 = vpop.f32.mrb[28].mxu0  ;;  %754 = vmatprep.mubr.f32.mxu1 %v2188_v25 }
 0x1b8   : > { %v556_v63 = vmax.f32 %v453_v62, 0.0  ;;  %v455_v0 = vpop.f32.mrb[29].mxu0 }
 0x1ba   : > { %755 = vmatmul.mubr.f32.gmra.mrb[28].mxu1 %v556_v63 }
 0x1bb   : > { %v458_v1 = vpop.f32.mrb[30].mxu0  ;;  %760 = vmatprep.mubr.f32.mxu1 %v2188_v25 }
 0x1bc   : > { %v557_v3 = vmax.f32 %v458_v1, 0.0  ;;  %v460_v4 = vpop.f32.mrb[31].mxu0 }
 0x1be   : > { %761 = vmatmul.mubr.f32.gmra.mrb[30].mxu1 %v557_v3 }
 0x1bf   : > { %v463_v5 = vpop.f32.mrb[32].mxu0  ;;  %766 = vmatprep.mubr.f32.mxu1 %v2188_v25 }
 0x1c0   : > { %v558_v7 = vmax.f32 %v463_v5, 0.0  ;;  %v465_v8 = vpop.f32.mrb[33].mxu0 }
 0x1c2   : > { %767 = vmatmul.mubr.f32.gmra.mrb[32].mxu1 %v558_v7 }
 0x1c3   : > { %v468_v9 = vpop.f32.mrb[34].mxu0  ;;  %772 = vmatprep.mubr.f32.mxu1 %v2188_v25 }
 0x1c4   : > { %v559_v11 = vmax.f32 %v468_v9, 0.0  ;;  %v470_v13 = vpop.f32.mrb[35].mxu0 }
 0x1c6   : > { %773 = vmatmul.mubr.f32.gmra.mrb[34].mxu1 %v559_v11 }
 0x1c7   : > { %v473_v14 = vpop.f32.mrb[36].mxu0  ;;  %778 = vmatprep.mubr.f32.mxu1 %v2188_v25 }
 0x1c8   : > { %v560_v16 = vmax.f32 %v473_v14, 0.0  ;;  %v475_v17 = vpop.f32.mrb[37].mxu0 }
 0x1ca   : > { %779 = vmatmul.mubr.f32.gmra.mrb[36].mxu1 %v560_v16 }
 0x1cb   : > { %v478_v18 = vpop.f32.mrb[38].mxu0  ;;  %784 = vmatprep.mubr.f32.mxu1 %v2188_v25 }
 0x1cc   : > { %v561_v20 = vmax.f32 %v478_v18, 0.0  ;;  %v480_v21 = vpop.f32.mrb[39].mxu0 }
 0x1ce   : > { %785 = vmatmul.mubr.f32.gmra.mrb[38].mxu1 %v561_v20 }
 0x1cf   : > { %v483_v22 = vpop.f32.mrb[40].mxu0  ;;  %790 = vmatprep.mubr.f32.mxu1 %v2188_v25 }
 0x1d0   : > { %v562_v24 = vmax.f32 %v483_v22, 0.0  ;;  %v485_v26 = vpop.f32.mrb[41].mxu0 }
 0x1d2   : > { %791 = vmatmul.mubr.f32.gmra.mrb[40].mxu1 %v562_v24 }
 0x1d3   : > { %v488_v28 = vpop.f32.mrb[42].mxu0  ;;  %796 = vmatprep.mubr.f32.mxu1 %v2188_v25 }
 0x1d4   : > { %v563_v29 = vmax.f32 %v488_v28, 0.0  ;;  %v490_v30 = vpop.f32.mrb[43].mxu0 }
 0x1d6   : > { %797 = vmatmul.mubr.f32.gmra.mrb[42].mxu1 %v563_v29 }
 0x1d7   : > { %v493_v32 = vpop.f32.mrb[44].mxu0  ;;  %802 = vmatprep.mubr.f32.mxu1 %v2188_v25 }
 0x1d8   : > { %v564_v33 = vmax.f32 %v493_v32, 0.0  ;;  %v495_v34 = vpop.f32.mrb[45].mxu0 }
 0x1da   : > { %803 = vmatmul.mubr.f32.gmra.mrb[44].mxu1 %v564_v33 }
 0x1db   : > { %v498_v36 = vpop.f32.mrb[46].mxu0  ;;  %808 = vmatprep.mubr.f32.mxu1 %v2188_v25 }
 0x1dc   : > { %v565_v37 = vmax.f32 %v498_v36, 0.0  ;;  %v500_v38 = vpop.f32.mrb[47].mxu0 }
 0x1de   : > { %809 = vmatmul.mubr.f32.gmra.mrb[46].mxu1 %v565_v37 }
 0x1df   : > { %v503_v40 = vpop.f32.mrb[48].mxu0  ;;  %814 = vmatprep.mubr.f32.mxu1 %v2188_v25 }
 0x1e0   : > { %v566_v41 = vmax.f32 %v503_v40, 0.0  ;;  %v505_v42 = vpop.f32.mrb[49].mxu0 }
 0x1e2   : > { %815 = vmatmul.mubr.f32.gmra.mrb[48].mxu1 %v566_v41 }
 0x1e3   : > { %v508_v44 = vpop.f32.mrb[50].mxu0  ;;  %820 = vmatprep.mubr.f32.mxu1 %v2188_v25 }
 0x1e4   : > { %v567_v55 = vmax.f32 %v508_v44, 0.0  ;;  %v510_v57 = vpop.f32.mrb[51].mxu0 }
 0x1e6   : > { %821 = vmatmul.mubr.f32.gmra.mrb[50].mxu1 %v567_v55 }
 0x1e7   : > { %v513_v58 = vpop.f32.mrb[52].mxu0  ;;  %826 = vmatprep.mubr.f32.mxu1 %v2188_v25 }
 0x1e8   : > { %v568_v59 = vmax.f32 %v513_v58, 0.0  ;;  %v515_v60 = vpop.f32.mrb[53].mxu0 }
 0x1ea   : > { %827 = vmatmul.mubr.f32.gmra.mrb[52].mxu1 %v568_v59 }
 0x1eb   : > { %v518_v61 = vpop.f32.mrb[54].mxu0  ;;  %832 = vmatprep.mubr.f32.mxu1 %v2188_v25 }
 0x1ec   : > { %v569_v62 = vmax.f32 %v518_v61, 0.0  ;;  %v520_v63 = vpop.f32.mrb[55].mxu0 }
 0x1ee   : > { %833 = vmatmul.mubr.f32.gmra.mrb[54].mxu1 %v569_v62 }
 0x1ef   : > { %v523_v0 = vpop.f32.mrb[56].mxu0  ;;  %838 = vmatprep.mubr.f32.mxu1 %v2188_v25 }
 0x1f0   : > { %v570_v1 = vmax.f32 %v523_v0, 0.0  ;;  %v525_v3 = vpop.f32.mrb[57].mxu0 }
 0x1f2   : > { %839 = vmatmul.mubr.f32.gmra.mrb[56].mxu1 %v570_v1 }
 0x1f3   : > { %v528_v4 = vpop.f32.mrb[58].mxu0  ;;  %844 = vmatprep.mubr.f32.mxu1 %v2188_v25 }
 0x1f4   : > { %v571_v5 = vmax.f32 %v528_v4, 0.0  ;;  %v530_v7 = vpop.f32.mrb[59].mxu0 }
 0x1f6   : > { %845 = vmatmul.mubr.f32.gmra.mrb[58].mxu1 %v571_v5 }
 0x1f7   : > { %v533_v8 = vpop.f32.mrb[60].mxu0  ;;  %850 = vmatprep.mubr.f32.mxu1 %v2188_v25 }
 0x1f8   : > { %v572_v9 = vmax.f32 %v533_v8, 0.0  ;;  %v535_v11 = vpop.f32.mrb[61].mxu0 }
 0x1fa   : > { %851 = vmatmul.mubr.f32.gmra.mrb[60].mxu1 %v572_v9 }
 0x1fb   : > { %v538_v13 = vpop.f32.mrb[62].mxu0  ;;  %856 = vmatprep.mubr.f32.mxu1 %v2188_v25 }
 0x1fc   : > { %v573_v14 = vmax.f32 %v538_v13, 0.0  ;;  %v540_v16 = vpop.f32.mrb[63].mxu0 }
 0x1fe   : > { %857 = vmatmul.mubr.f32.gmra.mrb[62].mxu1 %v573_v14 }
 0x255   : > { %v672_v17 = vpop.f32.mrb[0].mxu1 }
 0x256   : > { %v1496_v18 = vmul.f32 -1.442695, %v672_v17  ;;  %v674_v20 = vpop.f32.mrb[1].mxu1 }
 0x257   : > { %v1497_v21 = vmul.f32 -1.442695, %v674_v20 }
 0x258   : > { %1725 = vpow2.f32 %v1496_v18 }
 0x259   : > { %1727 = vpow2.f32 %v1497_v21  ;;  %v678_v22 = vpop.f32.mrb[2].mxu1 }
 0x25a   : > { %v1498_v24 = vmul.f32 -1.442695, %v678_v22  ;;  %v680_v26 = vpop.f32.mrb[3].mxu1 }
 0x25b   : > { %v1499_v28 = vmul.f32 -1.442695, %v680_v26 }
 0x25c   : > { %1729 = vpow2.f32 %v1498_v24 }
 0x25d   : > { %1731 = vpow2.f32 %v1499_v28  ;;  %v684_v29 = vpop.f32.mrb[4].mxu1 }
 0x25e   : > { %v1500_v30 = vmul.f32 -1.442695, %v684_v29  ;;  %v686_v32 = vpop.f32.mrb[5].mxu1 }
 0x25f   : > { %v1501_v33 = vmul.f32 -1.442695, %v686_v32 }
 0x260   : > { %1733 = vpow2.f32 %v1500_v30 }
 0x261   : > { %1735 = vpow2.f32 %v1501_v33  ;;  %v690_v25 = vpop.f32.mrb[6].mxu1 }
 0x262   : > { %v1726_v34 = vpop.eup %1725  ;;  %v1502_v36 = vmul.f32 -1.442695, %v690_v25  ;;  %v692_v37 = vpop.f32.mrb[7].mxu1 }
 0x263   : > { %v1728_v38 = vpop.eup %1727  ;;  %v1055_v40 = vadd.f32 1.0, %v1726_v34  ;;  %v1503_v41 = vmul.f32 -1.442695, %v692_v37 }
 0x264   : > { %v1056_v42 = vadd.f32 1.0, %v1728_v38  ;;  %1737 = vpow2.f32 %v1502_v36 }
 0x265   : > { %1739 = vrcp.f32 %v1055_v40  ;;  %v696_v44 = vpop.f32.mrb[8].mxu1 }
 0x266   : > { %v1730_v55 = vpop.eup %1729  ;;  %1741 = vrcp.f32 %v1056_v42  ;;  %v1504_v57 = vmul.f32 -1.442695, %v696_v44  ;;  %v698_v58 = vpop.f32.mrb[9].mxu1 }
 0x267   : > { %v1732_v59 = vpop.eup %1731  ;;  %v1057_v60 = vadd.f32 1.0, %v1730_v55  ;;  %1743 = vpow2.f32 %v1503_v41  ;;  %v1505_v61 = vmul.f32 -1.442695, %v698_v58 }
 0x268   : > { %v1058_v62 = vadd.f32 1.0, %v1732_v59  ;;  %1745 = vpow2.f32 %v1504_v57 }
 0x269   : > { %1747 = vrcp.f32 %v1057_v60  ;;  %v702_v63 = vpop.f32.mrb[10].mxu1 }
 0x26a   : > { %v1734_v0 = vpop.eup %1733  ;;  %1749 = vrcp.f32 %v1058_v62  ;;  %v1506_v1 = vmul.f32 -1.442695, %v702_v63  ;;  %v704_v3 = vpop.f32.mrb[11].mxu1 }
 0x26b   : > { %v1736_v4 = vpop.eup %1735  ;;  %v1059_v5 = vadd.f32 1.0, %v1734_v0  ;;  %1751 = vpow2.f32 %v1505_v61  ;;  %v1507_v7 = vmul.f32 -1.442695, %v704_v3 }
 0x26c   : > { %v1060_v8 = vadd.f32 1.0, %v1736_v4  ;;  %1753 = vpow2.f32 %v1506_v1 }
 0x26d   : > { %1755 = vrcp.f32 %v1059_v5  ;;  %v708_v9 = vpop.f32.mrb[12].mxu1 }
 0x26e   : > { %v1738_v11 = vpop.eup %1737  ;;  %1757 = vrcp.f32 %v1060_v8  ;;  %v1508_v13 = vmul.f32 -1.442695, %v708_v9  ;;  %v710_v14 = vpop.f32.mrb[13].mxu1 }
 0x26f   : > { %v1740_v16 = vpop.eup %1739  ;;  %v1061_v17 = vadd.f32 1.0, %v1738_v11  ;;  %1759 = vpow2.f32 %v1507_v7  ;;  %v1509_v18 = vmul.f32 -1.442695, %v710_v14 }
 0x270   : > { %v1742_v20 = vpop.eup %1741  ;;  %v1247_v21 = vmul.f32 %v1740_v16, %v2427_v50  ;;  %1761 = vpow2.f32 %v1508_v13 }
 0x271   : > { %v1744_v22 = vpop.eup %1743  ;;  %v1248_v24 = vmul.f32 %v1742_v20, %v2410_v12  ;;  %1763 = vrcp.f32 %v1061_v17  ;;  %v714_v26 = vpop.f32.mrb[14].mxu1 }
 0x272   : > { %v1746_v28 = vpop.eup %1745  ;;  %1311 = vst [vmem:[%s2591_s18] sm:$0xff] %v1247_v21  ;;  %v1062_v29 = vadd.f32 1.0, %v1744_v22  ;;  %1765 = vpow2.f32 %v1509_v18  ;;  %v1510_v30 = vmul.f32 -1.442695, %v714_v26  ;;  %v716_v32 = vpop.f32.mrb[15].mxu1 }
 0x273   : > { %v1748_v33 = vpop.eup %1747  ;;  %1312 = vst [vmem:[%s2591_s18 + $0x8] sm:$0xff] %v1248_v24  ;;  %v1063_v50 = vadd.f32 1.0, %v1746_v28  ;;  %v1511_v25 = vmul.f32 -1.442695, %v716_v32 }
 0x274   : > { %v1750_v12 = vpop.eup %1749  ;;  %v1249_v34 = vmul.f32 %v1748_v33, %v2435_v2  ;;  %1767 = vrcp.f32 %v1062_v29 }
 0x275   : > { %v1752_v36 = vpop.eup %1751  ;;  %v1250_v37 = vmul.f32 %v1750_v12, %v2430_v51  ;;  %1769 = vrcp.f32 %v1063_v50  ;;  %v720_v38 = vpop.f32.mrb[16].mxu1 }
 0x276   : > { %v1754_v40 = vpop.eup %1753  ;;  %1313 = vst [vmem:[%s2591_s18 + $0x10] sm:$0xff] %v1249_v34  ;;  %v1064_v41 = vadd.f32 1.0, %v1752_v36  ;;  %1771 = vpow2.f32 %v1510_v30  ;;  %v1512_v42 = vmul.f32 -1.442695, %v720_v38  ;;  %v722_v44 = vpop.f32.mrb[17].mxu1 }
 0x277   : > { %v1756_v55 = vpop.eup %1755  ;;  %1314 = vst [vmem:[%s2591_s18 + $0x18] sm:$0xff] %v1250_v37  ;;  %v1065_v57 = vadd.f32 1.0, %v1754_v40  ;;  %1773 = vpow2.f32 %v1511_v25  ;;  %v1513_v58 = vmul.f32 -1.442695, %v722_v44 }
 0x278   : > { %v1758_v2 = vpop.eup %1757  ;;  %v1251_v59 = vmul.f32 %v1756_v55, %v2443_v10  ;;  %1775 = vrcp.f32 %v1064_v41 }
 0x279   : > { %v1760_v51 = vpop.eup %1759  ;;  %v1252_v60 = vmul.f32 %v1758_v2, %v2438_v6  ;;  %1777 = vrcp.f32 %v1065_v57  ;;  %v726_v61 = vpop.f32.mrb[18].mxu1 }
 0x27a   : > { %v1762_v62 = vpop.eup %1761  ;;  %1315 = vst [vmem:[%s2591_s18 + $0x20] sm:$0xff] %v1251_v59  ;;  %v1066_v63 = vadd.f32 1.0, %v1760_v51  ;;  %1779 = vpow2.f32 %v1512_v42  ;;  %v1514_v0 = vmul.f32 -1.442695, %v726_v61  ;;  %v728_v1 = vpop.f32.mrb[19].mxu1 }
 0x27b   : > { %v1764_v3 = vpop.eup %1763  ;;  %1316 = vst [vmem:[%s2591_s18 + $0x28] sm:$0xff] %v1252_v60  ;;  %v1067_v4 = vadd.f32 1.0, %v1762_v62  ;;  %1781 = vpow2.f32 %v1513_v58  ;;  %v1515_v7 = vmul.f32 -1.442695, %v728_v1 }
 0x27c   : > { %v1766_v5 = vpop.eup %1765  ;;  %v1253_v10 = vmul.f32 %v1764_v3, %v2451_v19  ;;  %1783 = vrcp.f32 %v1066_v63 }
 0x27d   : > { %1785 = vrcp.f32 %v1067_v4  ;;  %v1068_v6 = vadd.f32 1.0, %v1766_v5  ;;  %v732_v8 = vpop.f32.mrb[20].mxu1 }
 0x27e   : > { %v1768_v9 = vpop.eup %1767  ;;  %1317 = vst [vmem:[%s2591_s18 + $0x30] sm:$0xff] %v1253_v10  ;;  %1787 = vpow2.f32 %v1514_v0  ;;  %v1516_v11 = vmul.f32 -1.442695, %v732_v8  ;;  %v734_v13 = vpop.f32.mrb[21].mxu1 }
 0x27f   : > { %v1770_v14 = vpop.eup %1769  ;;  %v1254_v16 = vmul.f32 %v1768_v9, %v2446_v15  ;;  %1789 = vrcp.f32 %v1068_v6  ;;  %v1517_v17 = vmul.f32 -1.442695, %v734_v13 }
 0x280   : > { %v1772_v18 = vpop.eup %1771  ;;  %v1255_v19 = vmul.f32 %v1770_v14, %v2459_v27  ;;  %1791 = vpow2.f32 %v1515_v7 }
 0x281   : > { %v1774_v20 = vpop.eup %1773  ;;  %1318 = vst [vmem:[%s2591_s18 + $0x38] sm:$0xff] %v1254_v16  ;;  %v1069_v21 = vadd.f32 1.0, %v1772_v18  ;;  %1793 = vpow2.f32 %v1516_v11  ;;  %v738_v22 = vpop.f32.mrb[22].mxu1 }
 0x282   : > { %v1776_v24 = vpop.eup %1775  ;;  %1319 = vst [vmem:[%s2591_s18 + $0x40] sm:$0xff] %v1255_v19  ;;  %v1070_v26 = vadd.f32 1.0, %v1774_v20  ;;  %1795 = vpow2.f32 %v1517_v17  ;;  %v1518_v28 = vmul.f32 -1.442695, %v738_v22  ;;  %v740_v29 = vpop.f32.mrb[23].mxu1 }
 0x283   : > { %v1778_v15 = vpop.eup %1777  ;;  %v1256_v30 = vmul.f32 %v1776_v24, %v2454_v23  ;;  %1797 = vrcp.f32 %v1069_v21  ;;  %v1519_v32 = vmul.f32 -1.442695, %v740_v29 }
 0x284   : > { %v1780_v27 = vpop.eup %1779  ;;  %v1257_v33 = vmul.f32 %v1778_v15, %v2467_v35  ;;  %1799 = vrcp.f32 %v1070_v26 }
 0x285   : > { %v1782_v50 = vpop.eup %1781  ;;  %1320 = vst [vmem:[%s2591_s18 + $0x48] sm:$0xff] %v1256_v30  ;;  %v1071_v25 = vadd.f32 1.0, %v1780_v27  ;;  %1801 = vpow2.f32 %v1518_v28  ;;  %v744_v12 = vpop.f32.mrb[24].mxu1 }
 0x286   : > { %v1784_v34 = vpop.eup %1783  ;;  %1321 = vst [vmem:[%s2591_s18 + $0x50] sm:$0xff] %v1257_v33  ;;  %v1072_v36 = vadd.f32 1.0, %v1782_v50  ;;  %1803 = vpow2.f32 %v1519_v32  ;;  %v1520_v37 = vmul.f32 -1.442695, %v744_v12  ;;  %v746_v38 = vpop.f32.mrb[25].mxu1 }
 0x287   : > { %v1786_v23 = vpop.eup %1785  ;;  %v1258_v40 = vmul.f32 %v1784_v34, %v2462_v31  ;;  %1805 = vrcp.f32 %v1071_v25  ;;  %v1521_v41 = vmul.f32 -1.442695, %v746_v38 }
 0x288   : > { %v1788_v35 = vpop.eup %1787  ;;  %v1259_v42 = vmul.f32 %v1786_v23, %v2475_v43  ;;  %1807 = vrcp.f32 %v1072_v36 }
 0x289   : > { %v1790_v44 = vpop.eup %1789  ;;  %1322 = vst [vmem:[%s2591_s18 + $0x58] sm:$0xff] %v1258_v40  ;;  %v1073_v55 = vadd.f32 1.0, %v1788_v35  ;;  %1809 = vpow2.f32 %v1520_v37  ;;  %v750_v57 = vpop.f32.mrb[26].mxu1 }
 0x28a   : > { %v1792_v58 = vpop.eup %1791  ;;  %1323 = vst [vmem:[%s2591_s18 + $0x60] sm:$0xff] %v1259_v42  ;;  %v1260_v2 = vmul.f32 %v1790_v44, %v2470_v39  ;;  %1811 = vpow2.f32 %v1521_v41  ;;  %v1522_v59 = vmul.f32 -1.442695, %v750_v57  ;;  %v752_v51 = vpop.f32.mrb[27].mxu1 }
 0x28b   : > { %v1794_v31 = vpop.eup %1793  ;;  %1813 = vrcp.f32 %v1073_v55  ;;  %v1074_v60 = vadd.f32 1.0, %v1792_v58  ;;  %v1523_v62 = vmul.f32 -1.442695, %v752_v51  ;;  %v1981_v55 = vld [vmem:[%s2396_s28 + $0xb8] sm:$0xff] }
 0x28c   : > { %v1796_v61 = vpop.eup %1795  ;;  %1324 = vst [vmem:[%s2591_s18 + $0x68] sm:$0xff] %v1260_v2  ;;  %v1075_v43 = vadd.f32 1.0, %v1794_v31  ;;  %1815 = vpow2.f32 %v1522_v59 }
 0x28d   : > { %v1798_v63 = vpop.eup %1797  ;;  %1817 = vrcp.f32 %v1074_v60  ;;  %v1076_v0 = vadd.f32 1.0, %v1796_v61  ;;  %v756_v1 = vpop.f32.mrb[28].mxu1 }
 0x28e   : > { %v1800_v3 = vpop.eup %1799  ;;  %v1261_v39 = vmul.f32 %v1798_v63, %v2483_v46  ;;  %1819 = vrcp.f32 %v1075_v43  ;;  %v1524_v4 = vmul.f32 -1.442695, %v756_v1  ;;  %v758_v5 = vpop.f32.mrb[29].mxu1  ;;  %v1982_v43 = vld [vmem:[%s2396_s28 + $0xc0] sm:$0xff]  ;;  %v1983_v1 = vld [vmem:[%s2396_s28 + $0xc8] sm:$0xff] }
 0x28f   : > { %v1802_v10 = vpop.eup %1801  ;;  %v1262_v7 = vmul.f32 %v1800_v3, %v2478_v45  ;;  %1821 = vrcp.f32 %v1076_v0  ;;  %v1525_v9 = vmul.f32 -1.442695, %v758_v5 }
 0x290   : > { %v1804_v6 = vpop.eup %1803  ;;  %1325 = vst [vmem:[%s2591_s18 + $0x70] sm:$0xff] %v1261_v39  ;;  %v1077_v8 = vadd.f32 1.0, %v1802_v10  ;;  %1823 = vpow2.f32 %v1523_v62 }
 0x291   : > { %v1806_v11 = vpop.eup %1805  ;;  %1326 = vst [vmem:[%s2591_s18 + $0x78] sm:$0xff] %v1262_v7  ;;  %v1078_v13 = vadd.f32 1.0, %v1804_v6  ;;  %1825 = vpow2.f32 %v1524_v4  ;;  %v762_v14 = vpop.f32.mrb[30].mxu1 }
 0x292   : > { %v1808_v46 = vpop.eup %1807  ;;  %v1263_v16 = vmul.f32 %v1806_v11, %v2491_v48  ;;  %1827 = vrcp.f32 %v1077_v8  ;;  %v1526_v17 = vmul.f32 -1.442695, %v762_v14  ;;  %v764_v18 = vpop.f32.mrb[31].mxu1  ;;  %v1984_v8 = vld [vmem:[%s2396_s28 + $0xd0] sm:$0xff] }
 0x293   : > { %v1810_v45 = vpop.eup %1809  ;;  %v1264_v19 = vmul.f32 %v1808_v46, %v2486_v47  ;;  %1829 = vrcp.f32 %v1078_v13  ;;  %v1527_v22 = vmul.f32 -1.442695, %v764_v18 }
 0x294   : > { %v1812_v20 = vpop.eup %1811  ;;  %1327 = vst [vmem:[%s2591_s18 + $0x80] sm:$0xff] %v1263_v16  ;;  %v1079_v21 = vadd.f32 1.0, %v1810_v45  ;;  %1831 = vpow2.f32 %v1525_v9 }
 0x295   : > { %v1814_v24 = vpop.eup %1813  ;;  %1328 = vst [vmem:[%s2591_s18 + $0x88] sm:$0xff] %v1264_v19  ;;  %v1080_v26 = vadd.f32 1.0, %v1812_v20  ;;  %1833 = vpow2.f32 %v1526_v17  ;;  %v768_v28 = vpop.f32.mrb[32].mxu1 }
 0x296   : > { %v1816_v29 = vpop.eup %1815  ;;  %v1265_v48 = vmul.f32 %v1814_v24, %v2499_v52  ;;  %1835 = vrcp.f32 %v1079_v21  ;;  %v1528_v15 = vmul.f32 -1.442695, %v768_v28  ;;  %v770_v30 = vpop.f32.mrb[33].mxu1  ;;  %v1986_v28 = vld [vmem:[%s2396_s28 + $0xe0] sm:$0xff] }
 0x297   : > { %v1818_v47 = vpop.eup %1817  ;;  %1837 = vrcp.f32 %v1080_v26  ;;  %v1081_v32 = vadd.f32 1.0, %v1816_v29  ;;  %v1529_v27 = vmul.f32 -1.442695, %v770_v30 }
 0x298   : > { %v1820_v33 = vpop.eup %1819  ;;  %1329 = vst [vmem:[%s2591_s18 + $0x90] sm:$0xff] %v1265_v48  ;;  %v1266_v50 = vmul.f32 %v1818_v47, %v2494_v49  ;;  %1839 = vpow2.f32 %v1527_v22  ;;  %v1985_v22 = vld [vmem:[%s2396_s28 + $0xd8] sm:$0xff] }
 0x299   : > { %v1822_v25 = vpop.eup %1821  ;;  %v1267_v12 = vmul.f32 %v1820_v33, %v2507_v54  ;;  %1841 = vrcp.f32 %v1081_v32  ;;  %v774_v52 = vpop.f32.mrb[34].mxu1 }
 0x29a   : > { %v1824_v34 = vpop.eup %1823  ;;  %1330 = vst [vmem:[%s2591_s18 + $0x98] sm:$0xff] %v1266_v50  ;;  %v1268_v36 = vmul.f32 %v1822_v25, %v2502_v53  ;;  %1843 = vpow2.f32 %v1528_v15  ;;  %v1530_v37 = vmul.f32 -1.442695, %v774_v52  ;;  %v776_v38 = vpop.f32.mrb[35].mxu1 }
 0x29b   : > { %v1826_v23 = vpop.eup %1825  ;;  %1331 = vst [vmem:[%s2591_s18 + $0xa0] sm:$0xff] %v1267_v12  ;;  %v1082_v40 = vadd.f32 1.0, %v1824_v34  ;;  %1845 = vpow2.f32 %v1529_v27  ;;  %v1531_v49 = vmul.f32 -1.442695, %v776_v38  ;;  %v1987_v12 = vld [vmem:[%s2396_s28 + $0xe8] sm:$0xff] }
 0x29c   : > { %v1828_v41 = vpop.eup %1827  ;;  %1332 = vst [vmem:[%s2591_s18 + $0xa8] sm:$0xff] %v1268_v36  ;;  %v1083_v35 = vadd.f32 1.0, %v1826_v23  ;;  %1847 = vpow2.f32 %v1530_v37  ;;  %v1988_v36 = vld [vmem:[%s2396_s28 + $0xf0] sm:$0xff] }
 0x29d   : > { %v1830_v54 = vpop.eup %1829  ;;  %v1269_v42 = vmul.f32 %v1828_v41, %v2512_v56  ;;  %1849 = vrcp.f32 %v1082_v40  ;;  %v780_v53 = vpop.f32.mrb[36].mxu1 }
 0x29e   : > { %v1832_v44 = vpop.eup %1831  ;;  %v1270_v57 = vmul.f32 %v1981_v55, %v1830_v54  ;;  %1851 = vrcp.f32 %v1083_v35  ;;  %v1532_v58 = vmul.f32 -1.442695, %v780_v53  ;;  %v782_v2 = vpop.f32.mrb[37].mxu1  ;;  %v1989_v53 = vld [vmem:[%s2396_s28 + $0xf8] sm:$0xff] }
 0x29f   : > { %v1834_v59 = vpop.eup %1833  ;;  %1333 = vst [vmem:[%s2591_s18 + $0xb0] sm:$0xff] %v1269_v42  ;;  %v1084_v51 = vadd.f32 1.0, %v1832_v44  ;;  %1853 = vpow2.f32 %v1531_v49  ;;  %v1533_v31 = vmul.f32 -1.442695, %v782_v2 }
 0x2a0   : > { %v1836_v60 = vpop.eup %1835  ;;  %1334 = vst [vmem:[%s2591_s18 + $0xb8] sm:$0xff] %v1270_v57  ;;  %v1085_v61 = vadd.f32 1.0, %v1834_v59  ;;  %1855 = vpow2.f32 %v1532_v58 }
 0x2a1   : > { %v1838_v56 = vpop.eup %1837  ;;  %v1271_v62 = vmul.f32 %v1982_v43, %v1836_v60  ;;  %1857 = vrcp.f32 %v1084_v51  ;;  %v786_v63 = vpop.f32.mrb[38].mxu1  ;;  %v1990_v51 = vld [vmem:[%s2396_s28 + $0x100] sm:$0xff]  ;;  %v1991_v43 = vld [vmem:[%s2396_s28 + $0x108] sm:$0xff] }
 0x2a2   : > { %v1840_v0 = vpop.eup %1839  ;;  %v1272_v3 = vmul.f32 %v1983_v1, %v1838_v56  ;;  %1859 = vrcp.f32 %v1085_v61  ;;  %v1534_v39 = vmul.f32 -1.442695, %v786_v63  ;;  %v788_v4 = vpop.f32.mrb[39].mxu1  ;;  %v1992_v1 = vld [vmem:[%s2396_s28 + $0x110] sm:$0xff] }
 0x2a3   : > { %v1842_v5 = vpop.eup %1841  ;;  %1335 = vst [vmem:[%s2591_s18 + $0xc0] sm:$0xff] %v1271_v62  ;;  %v1086_v10 = vadd.f32 1.0, %v1840_v0  ;;  %1861 = vpow2.f32 %v1533_v31  ;;  %v1535_v7 = vmul.f32 -1.442695, %v788_v4 }
 0x2a4   : > { %v1844_v6 = vpop.eup %1843  ;;  %1336 = vst [vmem:[%s2591_s18 + $0xc8] sm:$0xff] %v1272_v3  ;;  %v1273_v9 = vmul.f32 %v1984_v8, %v1842_v5  ;;  %1863 = vpow2.f32 %v1534_v39 }
 0x2a5   : > { %v1846_v11 = vpop.eup %1845  ;;  %1865 = vrcp.f32 %v1086_v10  ;;  %v1087_v13 = vadd.f32 1.0, %v1844_v6  ;;  %v792_v14 = vpop.f32.mrb[40].mxu1 }
 0x2a6   : > { %v1848_v46 = vpop.eup %1847  ;;  %1337 = vst [vmem:[%s2591_s18 + $0xd0] sm:$0xff] %v1273_v9  ;;  %v1088_v16 = vadd.f32 1.0, %v1846_v11  ;;  %1867 = vpow2.f32 %v1535_v7  ;;  %v1536_v17 = vmul.f32 -1.442695, %v792_v14  ;;  %v794_v18 = vpop.f32.mrb[41].mxu1  ;;  %v1993_v11 = vld [vmem:[%s2396_s28 + $0x118] sm:$0xff] }
 0x2a7   : > { %v1850_v45 = vpop.eup %1849  ;;  %1869 = vrcp.f32 %v1087_v13  ;;  %v1089_v19 = vadd.f32 1.0, %v1848_v46  ;;  %v1537_v20 = vmul.f32 -1.442695, %v794_v18 }
 0x2a8   : > { %v1852_v21 = vpop.eup %1851  ;;  %v1274_v24 = vmul.f32 %v1985_v22, %v1850_v45  ;;  %1871 = vrcp.f32 %v1088_v16  ;;  %v1994_v16 = vld [vmem:[%s2396_s28 + $0x120] sm:$0xff] }
 0x2a9   : > { %v1854_v26 = vpop.eup %1853  ;;  %v1275_v29 = vmul.f32 %v1986_v28, %v1852_v21  ;;  %1873 = vrcp.f32 %v1089_v19  ;;  %v798_v48 = vpop.f32.mrb[42].mxu1  ;;  %v1995_v28 = vld [vmem:[%s2396_s28 + $0x128] sm:$0xff] }
 0x2aa   : > { %v1856_v15 = vpop.eup %1855  ;;  %1338 = vst [vmem:[%s2591_s18 + $0xd8] sm:$0xff] %v1274_v24  ;;  %v1090_v30 = vadd.f32 1.0, %v1854_v26  ;;  %1875 = vpow2.f32 %v1536_v17  ;;  %v1538_v47 = vmul.f32 -1.442695, %v798_v48  ;;  %v800_v32 = vpop.f32.mrb[43].mxu1 }
 0x2ab   : > { %v1858_v27 = vpop.eup %1857  ;;  %1339 = vst [vmem:[%s2591_s18 + $0xe0] sm:$0xff] %v1275_v29  ;;  %v1091_v33 = vadd.f32 1.0, %v1856_v15  ;;  %1877 = vpow2.f32 %v1537_v20  ;;  %v1539_v50 = vmul.f32 -1.442695, %v800_v32 }
 0x2ac   : > { %v1860_v25 = vpop.eup %1859  ;;  %v1276_v52 = vmul.f32 %v1987_v12, %v1858_v27  ;;  %1879 = vrcp.f32 %v1090_v30  ;;  %v1996_v30 = vld [vmem:[%s2396_s28 + $0x130] sm:$0xff] }
 0x2ad   : > { %v1862_v34 = vpop.eup %1861  ;;  %v1277_v37 = vmul.f32 %v1988_v36, %v1860_v25  ;;  %1881 = vrcp.f32 %v1091_v33  ;;  %v804_v38 = vpop.f32.mrb[44].mxu1  ;;  %v1997_v25 = vld [vmem:[%s2396_s28 + $0x138] sm:$0xff] }
 0x2ae   : > { %v1864_v23 = vpop.eup %1863  ;;  %1340 = vst [vmem:[%s2591_s18 + $0xe8] sm:$0xff] %v1276_v52  ;;  %v1092_v40 = vadd.f32 1.0, %v1862_v34  ;;  %1883 = vpow2.f32 %v1538_v47  ;;  %v1540_v49 = vmul.f32 -1.442695, %v804_v38  ;;  %v806_v41 = vpop.f32.mrb[45].mxu1 }
 0x2af   : > { %v1866_v35 = vpop.eup %1865  ;;  %1341 = vst [vmem:[%s2591_s18 + $0xf0] sm:$0xff] %v1277_v37  ;;  %v1093_v54 = vadd.f32 1.0, %v1864_v23  ;;  %1885 = vpow2.f32 %v1539_v50  ;;  %v1541_v55 = vmul.f32 -1.442695, %v806_v41 }
 0x2b0   : > { %v1868_v42 = vpop.eup %1867  ;;  %v1278_v44 = vmul.f32 %v1989_v53, %v1866_v35  ;;  %1887 = vrcp.f32 %v1092_v40 }
 0x2b1   : > { %v1870_v57 = vpop.eup %1869  ;;  %1889 = vrcp.f32 %v1093_v54  ;;  %v1094_v58 = vadd.f32 1.0, %v1868_v42  ;;  %v810_v2 = vpop.f32.mrb[46].mxu1  ;;  %v1998_v42 = vld [vmem:[%s2396_s28 + $0x140] sm:$0xff] }
 0x2b2   : > { %v1872_v59 = vpop.eup %1871  ;;  %1342 = vst [vmem:[%s2591_s18 + $0xf8] sm:$0xff] %v1278_v44  ;;  %v1279_v31 = vmul.f32 %v1990_v51, %v1870_v57  ;;  %1891 = vpow2.f32 %v1540_v49  ;;  %v1542_v60 = vmul.f32 -1.442695, %v810_v2  ;;  %v812_v61 = vpop.f32.mrb[47].mxu1 }
 0x2b3   : > { %v1874_v56 = vpop.eup %1873  ;;  %v1280_v62 = vmul.f32 %v1991_v43, %v1872_v59  ;;  %1893 = vrcp.f32 %v1094_v58  ;;  %v1543_v63 = vmul.f32 -1.442695, %v812_v61  ;;  %v1999_v58 = vld [vmem:[%s2396_s28 + $0x148] sm:$0xff] }
 0x2b4   : > { %v1876_v0 = vpop.eup %1875  ;;  %1343 = vst [vmem:[%s2591_s18 + $0x100] sm:$0xff] %v1279_v31  ;;  %v1281_v3 = vmul.f32 %v1992_v1, %v1874_v56  ;;  %1895 = vpow2.f32 %v1541_v55 }
 0x2b5   : > { %v1878_v39 = vpop.eup %1877  ;;  %1344 = vst [vmem:[%s2591_s18 + $0x108] sm:$0xff] %v1280_v62  ;;  %v1095_v4 = vadd.f32 1.0, %v1876_v0  ;;  %1897 = vpow2.f32 %v1542_v60  ;;  %v816_v5 = vpop.f32.mrb[48].mxu1  ;;  %v2000_v62 = vld [vmem:[%s2396_s28 + $0x150] sm:$0xff] }
 0x2b6   : > { %v1880_v10 = vpop.eup %1879  ;;  %1345 = vst [vmem:[%s2591_s18 + $0x110] sm:$0xff] %v1281_v3  ;;  %v1096_v7 = vadd.f32 1.0, %v1878_v39  ;;  %1899 = vpow2.f32 %v1543_v63  ;;  %v1544_v6 = vmul.f32 -1.442695, %v816_v5  ;;  %v818_v8 = vpop.f32.mrb[49].mxu1  ;;  %v2001_v39 = vld [vmem:[%s2396_s28 + $0x158] sm:$0xff] }
 0x2b7   : > { %v1882_v9 = vpop.eup %1881  ;;  %v1282_v13 = vmul.f32 %v1993_v11, %v1880_v10  ;;  %1901 = vrcp.f32 %v1095_v4  ;;  %v1545_v14 = vmul.f32 -1.442695, %v818_v8 }
 0x2b8   : > { %v1884_v46 = vpop.eup %1883  ;;  %v1283_v17 = vmul.f32 %v1994_v16, %v1882_v9  ;;  %1903 = vrcp.f32 %v1096_v7 }
 0x2b9   : > { %v1886_v18 = vpop.eup %1885  ;;  %1346 = vst [vmem:[%s2591_s18 + $0x118] sm:$0xff] %v1282_v13  ;;  %v1097_v45 = vadd.f32 1.0, %v1884_v46  ;;  %1905 = vpow2.f32 %v1544_v6  ;;  %v822_v19 = vpop.f32.mrb[50].mxu1  ;;  %v2002_v13 = vld [vmem:[%s2396_s28 + $0x160] sm:$0xff] }
 0x2ba   : > { %v1888_v20 = vpop.eup %1887  ;;  %1347 = vst [vmem:[%s2591_s18 + $0x120] sm:$0xff] %v1283_v17  ;;  %v1098_v21 = vadd.f32 1.0, %v1886_v18  ;;  %1907 = vpow2.f32 %v1545_v14  ;;  %v1546_v22 = vmul.f32 -1.442695, %v822_v19  ;;  %v824_v24 = vpop.f32.mrb[51].mxu1 }
 0x2bb   : > { %v1890_v26 = vpop.eup %1889  ;;  %v1284_v29 = vmul.f32 %v1995_v28, %v1888_v20  ;;  %1909 = vrcp.f32 %v1097_v45  ;;  %v1547_v48 = vmul.f32 -1.442695, %v824_v24  ;;  %v2003_v20 = vld [vmem:[%s2396_s28 + $0x168] sm:$0xff]  ;;  %v2004_v24 = vld [vmem:[%s2396_s28 + $0x170] sm:$0xff] }
 0x2bc   : > { %v1892_v15 = vpop.eup %1891  ;;  %v1285_v47 = vmul.f32 %v1996_v30, %v1890_v26  ;;  %1911 = vrcp.f32 %v1098_v21 }
 0x2bd   : > { %v1894_v32 = vpop.eup %1893  ;;  %1348 = vst [vmem:[%s2591_s18 + $0x128] sm:$0xff] %v1284_v29  ;;  %v1099_v27 = vadd.f32 1.0, %v1892_v15  ;;  %1913 = vpow2.f32 %v1546_v22  ;;  %v828_v33 = vpop.f32.mrb[52].mxu1 }
 0x2be   : > { %v1896_v50 = vpop.eup %1895  ;;  %1349 = vst [vmem:[%s2591_s18 + $0x130] sm:$0xff] %v1285_v47  ;;  %v1286_v12 = vmul.f32 %v1997_v25, %v1894_v32  ;;  %1915 = vpow2.f32 %v1547_v48  ;;  %v1548_v52 = vmul.f32 -1.442695, %v828_v33  ;;  %v830_v34 = vpop.f32.mrb[53].mxu1  ;;  %v2005_v48 = vld [vmem:[%s2396_s28 + $0x178] sm:$0xff] }
 0x2bf   : > { %v1898_v36 = vpop.eup %1897  ;;  %1917 = vrcp.f32 %v1099_v27  ;;  %v1100_v37 = vadd.f32 1.0, %v1896_v50  ;;  %v1549_v40 = vmul.f32 -1.442695, %v830_v34 }
 0x2c0   : > { %v1900_v38 = vpop.eup %1899  ;;  %1350 = vst [vmem:[%s2591_s18 + $0x138] sm:$0xff] %v1286_v12  ;;  %v1101_v23 = vadd.f32 1.0, %v1898_v36  ;;  %1919 = vpow2.f32 %v1548_v52  ;;  %v2006_v52 = vld [vmem:[%s2396_s28 + $0x180] sm:$0xff] }
 0x2c1   : > { %v1902_v49 = vpop.eup %1901  ;;  %1921 = vrcp.f32 %v1100_v37  ;;  %v1102_v41 = vadd.f32 1.0, %v1900_v38  ;;  %v834_v35 = vpop.f32.mrb[54].mxu1  ;;  %v2007_v38 = vld [vmem:[%s2396_s28 + $0x188] sm:$0xff] }
 0x2c2   : > { %v1904_v54 = vpop.eup %1903  ;;  %v1287_v53 = vmul.f32 %v1998_v42, %v1902_v49  ;;  %1923 = vrcp.f32 %v1101_v23  ;;  %v1550_v44 = vmul.f32 -1.442695, %v834_v35  ;;  %v836_v55 = vpop.f32.mrb[55].mxu1 }
 0x2c3   : > { %v1906_v57 = vpop.eup %1905  ;;  %v1288_v2 = vmul.f32 %v1999_v58, %v1904_v54  ;;  %1925 = vrcp.f32 %v1102_v41  ;;  %v1551_v31 = vmul.f32 -1.442695, %v836_v55  ;;  %v2008_v55 = vld [vmem:[%s2396_s28 + $0x190] sm:$0xff] }
 0x2c4   : > { %v1908_v59 = vpop.eup %1907  ;;  %1351 = vst [vmem:[%s2591_s18 + $0x140] sm:$0xff] %v1287_v53  ;;  %v1103_v51 = vadd.f32 1.0, %v1906_v57  ;;  %1927 = vpow2.f32 %v1549_v40 }
 0x2c5   : > { %v1910_v60 = vpop.eup %1909  ;;  %1352 = vst [vmem:[%s2591_s18 + $0x148] sm:$0xff] %v1288_v2  ;;  %v1104_v61 = vadd.f32 1.0, %v1908_v59  ;;  %1929 = vpow2.f32 %v1550_v44  ;;  %v840_v56 = vpop.f32.mrb[56].mxu1  ;;  %v2009_v2 = vld [vmem:[%s2396_s28 + $0x198] sm:$0xff] }
 0x2c6   : > { %v1912_v43 = vpop.eup %1911  ;;  %v1289_v63 = vmul.f32 %v2000_v62, %v1910_v60  ;;  %1931 = vrcp.f32 %v1103_v51  ;;  %v1552_v0 = vmul.f32 -1.442695, %v840_v56  ;;  %v842_v1 = vpop.f32.mrb[57].mxu1 }
 0x2c7   : > { %v1914_v3 = vpop.eup %1913  ;;  %v1290_v4 = vmul.f32 %v2001_v39, %v1912_v43  ;;  %1933 = vrcp.f32 %v1104_v61  ;;  %v1553_v7 = vmul.f32 -1.442695, %v842_v1  ;;  %v2010_v61 = vld [vmem:[%s2396_s28 + $0x1a0] sm:$0xff] }
 0x2c8   : > { %v1916_v5 = vpop.eup %1915  ;;  %1353 = vst [vmem:[%s2591_s18 + $0x150] sm:$0xff] %v1289_v63  ;;  %v1105_v10 = vadd.f32 1.0, %v1914_v3  ;;  %1935 = vpow2.f32 %v1551_v31 }
 0x2c9   : > { %v1918_v6 = vpop.eup %1917  ;;  %1354 = vst [vmem:[%s2591_s18 + $0x158] sm:$0xff] %v1290_v4  ;;  %v1106_v8 = vadd.f32 1.0, %v1916_v5  ;;  %1937 = vpow2.f32 %v1552_v0  ;;  %v846_v9 = vpop.f32.mrb[58].mxu1  ;;  %v2011_v4 = vld [vmem:[%s2396_s28 + $0x1a8] sm:$0xff] }
 0x2ca   : > { %v1920_v11 = vpop.eup %1919  ;;  %v1291_v14 = vmul.f32 %v2002_v13, %v1918_v6  ;;  %1939 = vrcp.f32 %v1105_v10  ;;  %v1554_v46 = vmul.f32 -1.442695, %v846_v9  ;;  %v848_v16 = vpop.f32.mrb[59].mxu1 }
 0x2cb   : > { %v1922_v17 = vpop.eup %1921  ;;  %1941 = vrcp.f32 %v1106_v8  ;;  %v1107_v18 = vadd.f32 1.0, %v1920_v11  ;;  %v1555_v45 = vmul.f32 -1.442695, %v848_v16 }
 0x2cc   : > { %v1924_v19 = vpop.eup %1923  ;;  %1355 = vst [vmem:[%s2591_s18 + $0x160] sm:$0xff] %v1291_v14  ;;  %v1292_v21 = vmul.f32 %v2003_v20, %v1922_v17  ;;  %1943 = vpow2.f32 %v1553_v7  ;;  %v2012_v7 = vld [vmem:[%s2396_s28 + $0x1b0] sm:$0xff] }
 0x2cd   : > { %v1926_v22 = vpop.eup %1925  ;;  %v1293_v26 = vmul.f32 %v2004_v24, %v1924_v19  ;;  %1945 = vrcp.f32 %v1107_v18  ;;  %v852_v28 = vpop.f32.mrb[60].mxu1  ;;  %v2014_v18 = vld [vmem:[%s2396_s28 + $0x1c0] sm:$0xff] }
 0x2ce   : > { %v1928_v29 = vpop.eup %1927  ;;  %1356 = vst [vmem:[%s2591_s18 + $0x168] sm:$0xff] %v1292_v21  ;;  %v1294_v15 = vmul.f32 %v2005_v48, %v1926_v22  ;;  %1947 = vpow2.f32 %v1554_v46  ;;  %v1556_v30 = vmul.f32 -1.442695, %v852_v28  ;;  %v854_v47 = vpop.f32.mrb[61].mxu1  ;;  %v2013_v46 = vld [vmem:[%s2396_s28 + $0x1b8] sm:$0xff]  ;;  %v2015_v21 = vld [vmem:[%s2396_s28 + $0x1c8] sm:$0xff] }
 0x2cf   : > { %v1930_v32 = vpop.eup %1929  ;;  %1357 = vst [vmem:[%s2591_s18 + $0x170] sm:$0xff] %v1293_v26  ;;  %v1108_v27 = vadd.f32 1.0, %v1928_v29  ;;  %1949 = vpow2.f32 %v1555_v45  ;;  %v1557_v33 = vmul.f32 -1.442695, %v854_v47  ;;  %v2016_v28 = vld [vmem:[%s2396_s28 + $0x1d0] sm:$0xff]  ;;  %v2018_v47 = vld [vmem:[%s2396_s28 + $0x1e0] sm:$0xff] }
 0x2d0   : > { %v1932_v50 = vpop.eup %1931  ;;  %1358 = vst [vmem:[%s2591_s18 + $0x178] sm:$0xff] %v1294_v15  ;;  %v1109_v25 = vadd.f32 1.0, %v1930_v32  ;;  %1951 = vpow2.f32 %v1556_v30  ;;  %v2017_v15 = vld [vmem:[%s2396_s28 + $0x1d8] sm:$0xff] }
 0x2d1   : > { %v1934_v12 = vpop.eup %1933  ;;  %v1295_v34 = vmul.f32 %v2006_v52, %v1932_v50  ;;  %1953 = vrcp.f32 %v1108_v27  ;;  %v858_v36 = vpop.f32.mrb[62].mxu1  ;;  %v2019_v50 = vld [vmem:[%s2396_s28 + $0x1e8] sm:$0xff] }
 0x2d2   : > { %v1936_v37 = vpop.eup %1935  ;;  %v1296_v23 = vmul.f32 %v2007_v38, %v1934_v12  ;;  %1955 = vrcp.f32 %v1109_v25  ;;  %v1558_v40 = vmul.f32 -1.442695, %v858_v36  ;;  %v860_v49 = vpop.f32.mrb[63].mxu1  ;;  %v2020_v12 = vld [vmem:[%s2396_s28 + $0x1f0] sm:$0xff]  ;;  %v2021_v36 = vld [vmem:[%s2396_s28 + $0x1f8] sm:$0xff] }
 0x2d3   : > { %v1938_v41 = vpop.eup %1937  ;;  %1359 = vst [vmem:[%s2591_s18 + $0x180] sm:$0xff] %v1295_v34  ;;  %v1110_v35 = vadd.f32 1.0, %v1936_v37  ;;  %1957 = vpow2.f32 %v1557_v33  ;;  %v1559_v54 = vmul.f32 -1.442695, %v860_v49 }
 0x2d4   : > { %v1940_v42 = vpop.eup %1939  ;;  %1360 = vst [vmem:[%s2591_s18 + $0x188] sm:$0xff] %v1296_v23  ;;  %v1111_v53 = vadd.f32 1.0, %v1938_v41  ;;  %1959 = vpow2.f32 %v1558_v40 }
 0x2d5   : > { %v1942_v44 = vpop.eup %1941  ;;  %v1297_v57 = vmul.f32 %v2008_v55, %v1940_v42  ;;  %1961 = vrcp.f32 %v1110_v35 }
 0x2d6   : > { %v1944_v58 = vpop.eup %1943  ;;  %v1298_v59 = vmul.f32 %v2009_v2, %v1942_v44  ;;  %1963 = vrcp.f32 %v1111_v53 }
 0x2d7   : > { %v1946_v51 = vpop.eup %1945  ;;  %1361 = vst [vmem:[%s2591_s18 + $0x190] sm:$0xff] %v1297_v57  ;;  %v1112_v31 = vadd.f32 1.0, %v1944_v58  ;;  %1965 = vpow2.f32 %v1559_v54 }
 0x2d8   : > { %v1948_v60 = vpop.eup %1947  ;;  %1362 = vst [vmem:[%s2591_s18 + $0x198] sm:$0xff] %v1298_v59  ;;  %v1299_v56 = vmul.f32 %v2010_v61, %v1946_v51 }
 0x2d9   : > { %v1950_v43 = vpop.eup %1949  ;;  %1967 = vrcp.f32 %v1112_v31  ;;  %v1113_v62 = vadd.f32 1.0, %v1948_v60 }
 0x2da   : > { %v1952_v63 = vpop.eup %1951  ;;  %1363 = vst [vmem:[%s2591_s18 + $0x1a0] sm:$0xff] %v1299_v56  ;;  %v1114_v0 = vadd.f32 1.0, %v1950_v43 }
 0x2db   : > { %v1954_v1 = vpop.eup %1953  ;;  %1969 = vrcp.f32 %v1113_v62  ;;  %v1115_v3 = vadd.f32 1.0, %v1952_v63 }
 0x2dc   : > { %v1956_v39 = vpop.eup %1955  ;;  %v1300_v5 = vmul.f32 %v2011_v4, %v1954_v1  ;;  %1971 = vrcp.f32 %v1114_v0 }
 0x2dd   : > { %v1958_v10 = vpop.eup %1957  ;;  %v1301_v6 = vmul.f32 %v2012_v7, %v1956_v39  ;;  %1973 = vrcp.f32 %v1115_v3 }
 0x2de   : > { %v1960_v8 = vpop.eup %1959  ;;  %1364 = vst [vmem:[%s2591_s18 + $0x1a8] sm:$0xff] %v1300_v5  ;;  %v1116_v9 = vadd.f32 1.0, %v1958_v10 }
 0x2df   : > { %v1962_v11 = vpop.eup %1961  ;;  %1365 = vst [vmem:[%s2591_s18 + $0x1b0] sm:$0xff] %v1301_v6  ;;  %v1117_v13 = vadd.f32 1.0, %v1960_v8 }
 0x2e0   : > { %v1964_v14 = vpop.eup %1963  ;;  %v1302_v16 = vmul.f32 %v2013_v46, %v1962_v11  ;;  %1975 = vrcp.f32 %v1116_v9 }
 0x2e1   : > { %v1966_v17 = vpop.eup %1965  ;;  %v1303_v45 = vmul.f32 %v2014_v18, %v1964_v14  ;;  %1977 = vrcp.f32 %v1117_v13 }
 0x2e2   : > { %1366 = vst [vmem:[%s2591_s18 + $0x1b8] sm:$0xff] %v1302_v16  ;;  %v1118_v19 = vadd.f32 1.0, %v1966_v17 }
 0x2e3   : > { %v1968_v20 = vpop.eup %1967  ;;  %1367 = vst [vmem:[%s2591_s18 + $0x1c0] sm:$0xff] %v1303_v45 }
 0x2e4   : > { %v1304_v22 = vmul.f32 %v2015_v21, %v1968_v20  ;;  %1979 = vrcp.f32 %v1118_v19 }
 0x2e5   : > { %v1970_v24 = vpop.eup %1969 }
 0x2e6   : > { %v1972_v26 = vpop.eup %1971  ;;  %1368 = vst [vmem:[%s2591_s18 + $0x1c8] sm:$0xff] %v1304_v22  ;;  %v1305_v29 = vmul.f32 %v2016_v28, %v1970_v24 }
 0x2e7   : > { %v1974_v48 = vpop.eup %1973  ;;  %v1306_v30 = vmul.f32 %v2017_v15, %v1972_v26 }
 0x2e8   : > { %1369 = vst [vmem:[%s2591_s18 + $0x1d0] sm:$0xff] %v1305_v29  ;;  %v1307_v32 = vmul.f32 %v2018_v47, %v1974_v48 }
 0x2e9   : > { %1370 = vst [vmem:[%s2591_s18 + $0x1d8] sm:$0xff] %v1306_v30 }
 0x2ea   : > { %v1976_v27 = vpop.eup %1975  ;;  %1371 = vst [vmem:[%s2591_s18 + $0x1e0] sm:$0xff] %v1307_v32 }
 0x2eb   : > { %v1978_v33 = vpop.eup %1977  ;;  %v1308_v25 = vmul.f32 %v2019_v50, %v1976_v27 }
 0x2ec   : > { %v1309_v52 = vmul.f32 %v2020_v12, %v1978_v33 }
 0x2ed   : > { %1372 = vst [vmem:[%s2591_s18 + $0x1e8] sm:$0xff] %v1308_v25 }
 0x2ee   : > { %v1980_v34 = vpop.eup %1979  ;;  %1373 = vst [vmem:[%s2591_s18 + $0x1f0] sm:$0xff] %v1309_v52 }
 0x2ef   : > { %v1310_v37 = vmul.f32 %v2021_v36, %v1980_v34 }
 0x2f1   : > { %1374 = vst [vmem:[%s2591_s18 + $0x1f8] sm:$0xff] %v1310_v37 }
 0x2f2   : > { %2121 = shalt.err (!%p2118_p2)
}
 0x2f3   : > { %s2122_s10 = scalar_lea.hbm %s2722_s27, 8192  ;;  %s2126_s26 = scalar_lea.hbm %s2773_s3, 16384 }
 0x2f4   : > { %p2123_p13 = scmp.ne.s32.totalorder %s2722_s27, %s2122_s10  ;;  %p2127_p4 = scmp.lt.u32.totalorder %s2722_s27, %s2773_s3 }
 0x2f5   : > { %p2128_p7 = scmp.lt.u32.totalorder %s2126_s26, %s2122_s10  ;;  %p2130_p11 = scmp.lt.u32.totalorder %s2122_s10, %s2722_s27 }
 0x2f6   : > { %p2124_p6 = pnand %p2123_p13, %p2787_p0 }
 0x2f7   : > { %p2129_p8 = por %p2128_p7, %p2127_p4 }
 0x2f8   : > { %p2125_p10 = pneg %p2124_p6 }
 0x2f9   : > { %p2131_p1 = por %p2130_p11, %p2129_p8 }
 0x2fb   : > { %p2132_p3 = pnand %p2131_p1, %p2125_p10 }
 0x2fd   : > { %2135 = shalt.err (!%p2132_p3)
}
 0x2fe   : > { %s2190_s28 = smov 256   ;;  %s2191_s18 = smov 16  }
 0x2ff   : > { %1660 = dma.vmem_to_hbm [thread:$0]  (%p2787_p0), %s2724_s29, 8192, %s2722_s27, %s1376_s16, %s2190_s28, %s2190_s28, %s2191_s18  }
 0x300 PF: > { %s1405_s20 = sand.u32 1, %s2166_s12   ;;  %p2788_p5 = scmp.ne.s32.totalorder %s2778_s19, 0 }
 0x301   : > { %p2789_p9 = scmp.ge.s32.totalorder %s2178_s15, 2  ;;  %s1406_s30 = scalar_lea.sflag [#allocation4], %s1405_s20 }
 0x303   : > { %p1674_p12 = pnand %p2789_p9, %p2788_p5 }
 0x305   : > { %2161 = dma.done.wait (!%p1674_p12), %s1406_s30, 8192  }
 0x306   : > { %2163 = vsyncadd (!%p1674_p12), %s1406_s30, 4294959104  ;;  %p17_p2 = scmp.ge.s32.totalorder %s2325_s6, 4   ;;  %s2790_s12 = smov %s2170_s13 }
 0x307   : > { %s2791_s13 = smov %s2174_s14  ;;  %s2792_s14 = smov %s2334_s9 }
 0x308   : > { %s2793_s15 = smov %s2325_s6  ;;  %19 = sbr.rel (!%p17_p2) target bundleno = 6 (0x6), region = 85 }
 0x30f   :  { %1411 = vsyncpa [#allocation3], 1 }
 0x310   :  { %1413 = vsyncpa [#allocation3 + $0x1], 1 }
 0x311   :  { %1414 = vsyncpa [#allocation6], 1 }
 0x312   :  { %1415 = vsyncpa [#allocation4], 1 }
 0x313   :  { %1417 = vsyncpa [#allocation4 + $0x1], 1 }

</bundles_post_ra>
